<compile_context>
chip_gen: v7x
topology: tpu7x:2x2x1
jax: 0.10.0
libtpu: 0.0.40
codegen_flags: <defaults>
</compile_context>

<pallas_src>
import functools

import jax
import jax.numpy as jnp
from jax.experimental import pallas as pl
from jax.experimental.pallas import tpu as pltpu


NEG_INIT = -1e30   # running-max init for online softmax
BIG_NEG = -1e9     # additive bias for padded kv columns

# Default tile caps. With bf16 weight tiles the largest double-buffered linear
# working set stays at a few MiB - safe under v5e's 16 MiB scoped default once
# raised, v6e's 32 MiB and v7x's 64 MiB physical VMEM.
DEF_TM, DEF_TN, DEF_TK = 256, 256, 512
VMEM_LIMIT_BYTES = 32 * 1024 * 1024


def _round_up(x, m):
    return ((x + m - 1) // m) * m


def _pick_tile(dp, cap, mult, prefer_multi=False):
    """Largest tile <= cap that is a multiple of `mult` and divides `dp`
    (dp is already a multiple of mult).  With prefer_multi, split a single
    block in two when cheap so v7x's 2 TensorCores both get work."""
    t = min(cap, dp)
    t -= t % mult
    t = max(t, mult)
    while dp % t != 0:
        t -= mult
    if prefer_multi and dp // t == 1 and dp >= 2 * mult and (dp // 2) % mult == 0:
        t = dp // 2
    return t


def _pad2d(x, r, c):
    pr, pc = r - x.shape[0], c - x.shape[1]
    if pr == 0 and pc == 0:
        return x
    return jnp.pad(x, ((0, pr), (0, pc)))


# ----------------------------------------------------------------------------
# LayerNorm (tiled over rows)
# ----------------------------------------------------------------------------

def _layernorm_kernel(x_ref, g_ref, b_ref, o_ref):
    x = x_ref[...].astype(jnp.float32)
    mean = jnp.mean(x, axis=-1, keepdims=True)
    var = jnp.mean((x - mean) * (x - mean), axis=-1, keepdims=True)
    inv = jax.lax.rsqrt(var + 1e-5)
    o_ref[...] = ((x - mean) * inv * g_ref[...] + b_ref[...]).astype(o_ref.dtype)


def layernorm(x2d, gamma, beta, out_dtype=jnp.float32):
    M, H = x2d.shape
    Mp = _round_up(M, 8)
    tm = _pick_tile(Mp, 512, 8, prefer_multi=True)
    xp = x2d if Mp == M else jnp.pad(x2d, ((0, Mp - M), (0, 0)))
    out = pl.pallas_call(
        _layernorm_kernel,
        out_shape=jax.ShapeDtypeStruct((Mp, H), out_dtype),
        grid=(Mp // tm,),
        in_specs=[
            pl.BlockSpec((tm, H), lambda i: (i, 0)),
            pl.BlockSpec((1, H), lambda i: (0, 0)),
            pl.BlockSpec((1, H), lambda i: (0, 0)),
        ],
        out_specs=pl.BlockSpec((tm, H), lambda i: (i, 0)),
        compiler_params=pltpu.CompilerParams(dimension_semantics=("parallel",)),
    )(xp, gamma.reshape(1, H), beta.reshape(1, H))
    return out[:M]


# ----------------------------------------------------------------------------
# Tiled linear: y = act(x @ W (+ bias)) (+ residual); W may be [N, K]
# ----------------------------------------------------------------------------

def _linear_kernel(*refs, activation, transpose_rhs, has_residual):
    if has_residual:
        x_ref, w_ref, b_ref, r_ref, o_ref, acc_ref = refs
    else:
        x_ref, w_ref, b_ref, o_ref, acc_ref = refs
        r_ref = None

    @pl.when(pl.program_id(2) == 0)
    def _():
        acc_ref[...] = jnp.zeros_like(acc_ref)

    x = x_ref[...].astype(jnp.bfloat16)       # MXU bf16 operands
    w = w_ref[...].astype(jnp.bfloat16)
    if transpose_rhs:
        # contract x[:, k] with w[:, k]  (w stored as [N, K])
        # TODO(synk): verify in the bundle dump that Mosaic does not insert a
        # per-k-step XLU transpose of the weight tile for the vocab projection;
        # if it does, pre-transpose word_emb once outside instead.
        acc_ref[...] += jax.lax.dot_general(
            x, w, (((1,), (1,)), ((), ())), preferred_element_type=jnp.float32)
    else:
        acc_ref[...] += jnp.dot(x, w, preferred_element_type=jnp.float32)

    @pl.when(pl.program_id(2) == pl.num_programs(2) - 1)
    def _():
        out = acc_ref[...] + b_ref[...]
        if activation == "gelu":
            # GLM uses the tanh-approximation gelu (f32 epilogue math).
            out = 0.5 * out * (1.0 + jnp.tanh(
                0.7978845608028654 * (out + 0.044715 * out * out * out)))
        if has_residual:
            out = out + r_ref[...].astype(jnp.float32)
        o_ref[...] = out.astype(o_ref.dtype)


def linear(x2d, w, b=None, activation=None, residual=None, transpose_rhs=False,
           out_dtype=jnp.float32):
    """y = activation(x @ W + b) (+ residual).

    W is [K, N] normally, or [N, K] when transpose_rhs=True (native embedding
    layout for the vocab projection).  Divisor tiles of the 128-aligned dims
    are chosen so weights are not re-padded per call."""
    M, K = x2d.shape
    if transpose_rhs:
        N, K2 = w.shape
    else:
        K2, N = w.shape
    assert K == K2
    if b is None:
        b = jnp.zeros((N,), jnp.float32)

    Mp, Np, Kp = _round_up(M, 8), _round_up(N, 128), _round_up(K, 128)
    tm = _pick_tile(Mp, DEF_TM, 8, prefer_multi=True)
    tn = _pick_tile(Np, DEF_TN, 128, prefer_multi=True)
    tk = _pick_tile(Kp, DEF_TK, 128)

    xp = _pad2d(x2d, Mp, Kp)
    if transpose_rhs:
        wp = _pad2d(w, Np, Kp)
        w_spec = pl.BlockSpec((tn, tk), lambda i, j, k: (j, k))
    else:
        wp = _pad2d(w, Kp, Np)
        w_spec = pl.BlockSpec((tk, tn), lambda i, j, k: (k, j))
    bp = (b if Np == N else jnp.pad(b, (0, Np - N))).reshape(1, Np)

    inputs = [xp, wp, bp]
    in_specs = [
        pl.BlockSpec((tm, tk), lambda i, j, k: (i, k)),
        w_spec,
        pl.BlockSpec((1, tn), lambda i, j, k: (0, j)),
    ]
    if residual is not None:
        inputs.append(_pad2d(residual, Mp, Np))
        in_specs.append(pl.BlockSpec((tm, tn), lambda i, j, k: (i, j)))

    kern = functools.partial(_linear_kernel, activation=activation,
                             transpose_rhs=transpose_rhs,
                             has_residual=residual is not None)
    out = pl.pallas_call(
        kern,
        out_shape=jax.ShapeDtypeStruct((Mp, Np), out_dtype),
        grid=(Mp // tm, Np // tn, Kp // tk),
        in_specs=in_specs,
        out_specs=pl.BlockSpec((tm, tn), lambda i, j, k: (i, j)),
        scratch_shapes=[pltpu.VMEM((tm, tn), jnp.float32)],
        compiler_params=pltpu.CompilerParams(
            dimension_semantics=("parallel", "parallel", "arbitrary"),
            vmem_limit_bytes=VMEM_LIMIT_BYTES),
    )(*inputs)
    return out[:M, :N]


# ----------------------------------------------------------------------------
# Flash-style multi-head attention, head as a grid axis
# ----------------------------------------------------------------------------

def _flash_attn_kernel(q_ref, k_ref, v_ref, bias_ref, o_ref,
                       m_sc, l_sc, acc_sc, *, scale):
    kv = pl.program_id(3)

    @pl.when(kv == 0)
    def _():
        m_sc[...] = jnp.full_like(m_sc, NEG_INIT)
        l_sc[...] = jnp.zeros_like(l_sc)
        acc_sc[...] = jnp.zeros_like(acc_sc)

    q = q_ref[0, 0, 0]                       # [tq,  Dh]  bf16
    k = k_ref[0, 0, 0]                       # [tkv, Dh]  bf16
    v = v_ref[0, 0, 0]                       # [tkv, Dh]  bf16
    bias = bias_ref[0].astype(jnp.float32)   # [tq, tkv]  (0 = attend)

    s = jax.lax.dot_general(q, k, (((1,), (1,)), ((), ())),
                            preferred_element_type=jnp.float32)
    s = s * scale + bias
    m_prev = m_sc[...]
    m_new = jnp.maximum(m_prev, jnp.max(s, axis=-1, keepdims=True))
    alpha = jnp.exp(m_prev - m_new)
    p = jnp.exp(s - m_new)
    l_sc[...] = alpha * l_sc[...] + jnp.sum(p, axis=-1, keepdims=True)
    m_sc[...] = m_new
    acc_sc[...] = alpha * acc_sc[...] + jnp.dot(
        p.astype(jnp.bfloat16), v, preferred_element_type=jnp.float32)

    @pl.when(kv == pl.num_programs(3) - 1)
    def _():
        o_ref[0, 0] = (acc_sc[...] *
                       pl.reciprocal(l_sc[...], approx=True)).astype(o_ref.dtype)


def attention(qkv3, bias):
    """qkv3: [3, B, nh, S, Dh] (bf16, q/k/v stacked); bias: [B, S, S] additive
    attention bias (0 = attend, -1e4 = masked).  Returns [B, nh, S, Dh] bf16."""
    _, B, nh, S, Dh = qkv3.shape
    scale = 1.0 / (float(Dh) ** 0.5)

    if S <= 128:
        Sp = _round_up(S, 8)
        tile = Sp                                   # full-dim block (lane rule)
    else:
        Sp = _round_up(S, 128)
        tile = 256 if Sp % 256 == 0 else 128        # feed the 256x256 MXU
    pad_s = Sp - S
    qkvp = qkv3 if pad_s == 0 else jnp.pad(
        qkv3, ((0, 0), (0, 0), (0, 0), (0, pad_s), (0, 0)))
    biasp = bias if pad_s == 0 else jnp.pad(
        bias, ((0, 0), (0, pad_s), (0, pad_s)), constant_values=BIG_NEG)

    kern = functools.partial(_flash_attn_kernel, scale=scale)
    qkv_block = (1, 1, 1, tile, Dh)
    out = pl.pallas_call(
        kern,
        out_shape=jax.ShapeDtypeStruct((B, nh, Sp, Dh), jnp.bfloat16),
        grid=(B, nh, Sp // tile, Sp // tile),
        in_specs=[
            pl.BlockSpec(qkv_block, lambda b, h, qi, ki: (0, b, h, qi, 0)),  # q
            pl.BlockSpec(qkv_block, lambda b, h, qi, ki: (1, b, h, ki, 0)),  # k
            pl.BlockSpec(qkv_block, lambda b, h, qi, ki: (2, b, h, ki, 0)),  # v
            # bias index_map ignores h -> same block stays resident across heads
            pl.BlockSpec((1, tile, tile), lambda b, h, qi, ki: (b, qi, ki)),
        ],
        out_specs=pl.BlockSpec((1, 1, tile, Dh), lambda b, h, qi, ki: (b, h, qi, 0)),
        scratch_shapes=[
            pltpu.VMEM((tile, 1), jnp.float32),    # running max
            pltpu.VMEM((tile, 1), jnp.float32),    # running sum
            pltpu.VMEM((tile, Dh), jnp.float32),   # output accumulator
        ],
        compiler_params=pltpu.CompilerParams(
            dimension_semantics=("parallel", "parallel", "parallel", "arbitrary"),
            vmem_limit_bytes=VMEM_LIMIT_BYTES),
    )(qkvp, qkvp, qkvp, biasp)
    return out[:, :, :S, :]


# ----------------------------------------------------------------------------
# Transformer built from the kernels (glue / reshapes in plain JAX)
# ----------------------------------------------------------------------------

def transformer_layer(h2d, bias, p, num_heads, B, S):
    """GLM GPT2ParallelTransformerLayer (pre-LN, self-attention + MLP)."""
    H = h2d.shape[1]
    Dh = H // num_heads

    ln1 = layernorm(h2d, p["ln1_g"], p["ln1_b"], out_dtype=jnp.bfloat16)
    qkv = linear(ln1, p["w_qkv"], p["b_qkv"], out_dtype=jnp.bfloat16)   # [B*S,3H]
    # One layout transpose to heads-major; the attention kernel then reads
    # q/k/v straight out of this buffer (no per-head lane slicing in-kernel).
    qkv3 = qkv.reshape(B, S, 3, num_heads, Dh).transpose(2, 0, 3, 1, 4)
    ctx = attention(qkv3, bias)                                         # [B,nh,S,Dh]
    ctx2d = ctx.transpose(0, 2, 1, 3).reshape(B * S, H)
    res1 = linear(ctx2d, p["w_o"], p["b_o"], residual=h2d)              # fused res 1

    ln2 = layernorm(res1, p["ln2_g"], p["ln2_b"], out_dtype=jnp.bfloat16)
    mlp_h = linear(ln2, p["w_fc1"], p["b_fc1"], activation="gelu",
                   out_dtype=jnp.bfloat16)
    out = linear(mlp_h, p["w_fc2"], p["b_fc2"], residual=res1)          # fused res 2
    return out


def transformer(embeddings, position_ids, mask, params, num_heads):
    """GLM GPT2ParallelTransformer: +pos-emb, N layers, final layernorm."""
    B, S, H = embeddings.shape
    pos = jnp.take(params["pos_emb"], position_ids, axis=0)             # [B,S,H]
    h2d = (embeddings + pos).reshape(B * S, H)
    # embedding_dropout: eval mode -> no-op
    # GLM masking `s*mask - 10000*(1-mask)` expressed once as an additive bias,
    # stored bf16 to halve its HBM stream.
    bias = ((mask[:, 0].astype(jnp.float32) - 1.0) * 10000.0).astype(jnp.bfloat16)
    for layer_p in params["layers"]:
        h2d = transformer_layer(h2d, bias, layer_p, num_heads, B, S)
    h2d = layernorm(h2d, params["final_ln_g"], params["final_ln_b"])
    return h2d.reshape(B, S, H)


def encoder_decoder_forward(params, source_ids, target_ids,
                            source_position_ids, target_position_ids,
                            source_mask, target_mask, num_heads):
    word_emb = params["word_emb"]                                        # [V,H] bf16
    source_embeddings = jnp.take(word_emb, source_ids, axis=0).astype(jnp.float32)
    target_embeddings = jnp.take(word_emb, target_ids, axis=0).astype(jnp.float32)

    encoder_output = transformer(source_embeddings, source_position_ids,
                                 source_mask, params["encoder"], num_heads)
    # NOTE: as in the reference forward, the decoder receives no encoder memory.
    # TODO(synk): cross-attention of use_decoder_layer=True is never exercised
    # by this forward (no encoder_states are passed), so it is not implemented.
    decoder_output = transformer(target_embeddings, target_position_ids,
                                 target_mask, params["decoder"], num_heads)

    B, S, H = decoder_output.shape
    V = word_emb.shape[0]
    # output_predict / parallel_output path: logits = F.linear(dec, word_emb).
    # word_emb is read in its native [V, H] layout (transpose_rhs=True).
    logits = linear(decoder_output.reshape(B * S, H), word_emb,
                    transpose_rhs=True).reshape(B, S, V)
    return (logits,), encoder_output


# ----------------------------------------------------------------------------
# Deterministic parameter init (shapes from the module __init__)
# ----------------------------------------------------------------------------

def _init_layer(key, hidden):
    ks = jax.random.split(key, 4)
    bf = jnp.bfloat16
    return {
        "ln1_g": jnp.ones((hidden,), jnp.float32),
        "ln1_b": jnp.zeros((hidden,), jnp.float32),
        "w_qkv": (0.02 * jax.random.normal(ks[0], (hidden, 3 * hidden))).astype(bf),
        "b_qkv": jnp.zeros((3 * hidden,), jnp.float32),
        "w_o": (0.02 * jax.random.normal(ks[1], (hidden, hidden))).astype(bf),
        "b_o": jnp.zeros((hidden,), jnp.float32),
        "ln2_g": jnp.ones((hidden,), jnp.float32),
        "ln2_b": jnp.zeros((hidden,), jnp.float32),
        "w_fc1": (0.02 * jax.random.normal(ks[2], (hidden, 4 * hidden))).astype(bf),
        "b_fc1": jnp.zeros((4 * hidden,), jnp.float32),
        "w_fc2": (0.02 * jax.random.normal(ks[3], (4 * hidden, hidden))).astype(bf),
        "b_fc2": jnp.zeros((hidden,), jnp.float32),
    }


def _init_transformer(key, num_layers, hidden, max_seq):
    keys = jax.random.split(key, num_layers + 1)
    return {
        "pos_emb": 0.02 * jax.random.normal(keys[0], (max_seq, hidden), jnp.float32),
        "layers": [_init_layer(keys[i + 1], hidden) for i in range(num_layers)],
        "final_ln_g": jnp.ones((hidden,), jnp.float32),
        "final_ln_b": jnp.zeros((hidden,), jnp.float32),
    }


def init_params(key, num_layers, vocab, hidden, max_seq):
    k_emb, k_enc, k_dec = jax.random.split(key, 3)
    return {
        "word_emb": (0.02 * jax.random.normal(k_emb, (vocab, hidden))).astype(jnp.bfloat16),
        "encoder": _init_transformer(k_enc, num_layers, hidden, max_seq),
        "decoder": _init_transformer(k_dec, num_layers, hidden, max_seq),
    }


# ----------------------------------------------------------------------------
# Main
# ----------------------------------------------------------------------------

if __name__ == "__main__":
    # Small but hardware-aligned shapes (hidden = 128 lanes, rows % 8 == 0).
    num_layers = 2
    vocab_size = 256
    hidden_size = 128
    num_heads = 4
    max_seq = 32
    batch = 2
    src_len = 16
    tgt_len = 16

    root = jax.random.PRNGKey(0)
    k_params, k_src, k_tgt = jax.random.split(root, 3)
    params = init_params(k_params, num_layers, vocab_size, hidden_size, max_seq)

    source_ids = jax.random.randint(k_src, (batch, src_len), 0, vocab_size)
    target_ids = jax.random.randint(k_tgt, (batch, tgt_len), 0, vocab_size)
    source_position_ids = jnp.tile(jnp.arange(src_len)[None, :], (batch, 1))
    target_position_ids = jnp.tile(jnp.arange(tgt_len)[None, :], (batch, 1))
    # encoder: full bidirectional attention; decoder: causal (ltor) mask.
    source_mask = jnp.ones((batch, 1, src_len, src_len), jnp.float32)
    target_mask = jnp.tril(jnp.ones((tgt_len, tgt_len), jnp.float32))[None, None]
    target_mask = jnp.tile(target_mask, (batch, 1, 1, 1))

    fwd = jax.jit(functools.partial(encoder_decoder_forward, num_heads=num_heads))
    (logits,), enc_out = fwd(params, source_ids, target_ids,
                             source_position_ids, target_position_ids,
                             source_mask, target_mask)
    jax.block_until_ready(logits)
    jax.block_until_ready(enc_out)

    assert logits.shape == (batch, tgt_len, vocab_size)
    assert enc_out.shape == (batch, src_len, hidden_size)
    assert bool(jnp.all(jnp.isfinite(logits)))
    assert bool(jnp.all(jnp.isfinite(enc_out)))
    print("KERNEL_OK")
</pallas_src>

<mosaic_0001>
module attributes {stable_mosaic.version = 11 : i64} {
  func.func @_layernorm_kernel(%arg0: i32, %arg1: memref<16x128xf32, #tpu.memory_space<vmem>>, %arg2: memref<1x128xf32, #tpu.memory_space<vmem>>, %arg3: memref<1x128xf32, #tpu.memory_space<vmem>>, %arg4: memref<16x128xbf16, #tpu.memory_space<vmem>>) attributes {dimension_semantics = [#tpu.dimension_semantics<parallel>], iteration_bounds = array<i64: 2>, scalar_prefetch = 0 : i64, scratch_operands = 0 : i64, tpu.core_type = #tpu.core_type<tc>, window_params = [{transform_indices = @transform_0, window_bounds = array<i64: 16, 128>}, {pipeline_mode = #tpu.pipeline_mode<synchronous>, transform_indices = @transform_1, window_bounds = array<i64: 1, 128>}, {pipeline_mode = #tpu.pipeline_mode<synchronous>, transform_indices = @transform_2, window_bounds = array<i64: 1, 128>}, {transform_indices = @transform_3, window_bounds = array<i64: 16, 128>}]} {
    %c0 = arith.constant 0 : index
    %c0_0 = arith.constant 0 : index
    %0 = vector.load %arg1[%c0, %c0_0] : memref<16x128xf32, #tpu.memory_space<vmem>>, vector<16x128xf32>
    %cst = arith.constant dense<0.000000e+00> : vector<16xf32>
    %1 = vector.multi_reduction <add>, %0, %cst [1] : vector<16x128xf32> to vector<16xf32>
    %2 = vector.shape_cast %1 : vector<16xf32> to vector<16x1xf32>
    %cst_1 = arith.constant 1.280000e+02 : f32
    %3 = vector.broadcast %cst_1 : f32 to vector<16x1xf32>
    %4 = arith.divf %2, %3 : vector<16x1xf32>
    %5 = vector.broadcast %4 : vector<16x1xf32> to vector<16x128xf32>
    %6 = arith.subf %0, %5 : vector<16x128xf32>
    %7 = vector.broadcast %4 : vector<16x1xf32> to vector<16x128xf32>
    %8 = arith.subf %0, %7 : vector<16x128xf32>
    %9 = arith.mulf %6, %8 : vector<16x128xf32>
    %cst_2 = arith.constant dense<0.000000e+00> : vector<16xf32>
    %10 = vector.multi_reduction <add>, %9, %cst_2 [1] : vector<16x128xf32> to vector<16xf32>
    %11 = vector.shape_cast %10 : vector<16xf32> to vector<16x1xf32>
    %cst_3 = arith.constant 1.280000e+02 : f32
    %12 = vector.broadcast %cst_3 : f32 to vector<16x1xf32>
    %13 = arith.divf %11, %12 : vector<16x1xf32>
    %cst_4 = arith.constant 9.99999974E-6 : f32
    %14 = vector.broadcast %cst_4 : f32 to vector<16x1xf32>
    %15 = arith.addf %13, %14 : vector<16x1xf32>
    %16 = math.rsqrt %15 : vector<16x1xf32>
    %17 = vector.broadcast %4 : vector<16x1xf32> to vector<16x128xf32>
    %18 = arith.subf %0, %17 : vector<16x128xf32>
    %19 = vector.broadcast %16 : vector<16x1xf32> to vector<16x128xf32>
    %20 = arith.mulf %18, %19 : vector<16x128xf32>
    %c0_5 = arith.constant 0 : index
    %c0_6 = arith.constant 0 : index
    %21 = vector.load %arg2[%c0_5, %c0_6] : memref<1x128xf32, #tpu.memory_space<vmem>>, vector<1x128xf32>
    %22 = vector.broadcast %21 : vector<1x128xf32> to vector<16x128xf32>
    %23 = arith.mulf %20, %22 : vector<16x128xf32>
    %c0_7 = arith.constant 0 : index
    %c0_8 = arith.constant 0 : index
    %24 = vector.load %arg3[%c0_7, %c0_8] : memref<1x128xf32, #tpu.memory_space<vmem>>, vector<1x128xf32>
    %25 = vector.broadcast %24 : vector<1x128xf32> to vector<16x128xf32>
    %26 = arith.addf %23, %25 : vector<16x128xf32>
    %27 = arith.truncf %26 : vector<16x128xf32> to vector<16x128xbf16>
    %c0_9 = arith.constant 0 : index
    %c0_10 = arith.constant 0 : index
    %28 = vector.load %arg4[%c0_9, %c0_10] : memref<16x128xbf16, #tpu.memory_space<vmem>>, vector<16x128xbf16>
    tpu.vector_store %arg4[%c0_9, %c0_10], %27 {strides = array<i32>} : memref<16x128xbf16, #tpu.memory_space<vmem>>, vector<16x128xbf16>,
    return
  }
  func.func @transform_0(%arg0: i32) -> (i32, i32) {
    %c0_i32 = arith.constant 0 : i32
    %c0_i32_0 = arith.constant 0 : i32
    return %arg0, %c0_i32 : i32, i32
  }
  func.func @transform_1(%arg0: i32) -> (i32, i32) {
    %c0_i32 = arith.constant 0 : i32
    %c0_i32_0 = arith.constant 0 : i32
    %c0_i32_1 = arith.constant 0 : i32
    return %c0_i32, %c0_i32_0 : i32, i32
  }
  func.func @transform_2(%arg0: i32) -> (i32, i32) {
    %c0_i32 = arith.constant 0 : i32
    %c0_i32_0 = arith.constant 0 : i32
    %c0_i32_1 = arith.constant 0 : i32
    return %c0_i32, %c0_i32_0 : i32, i32
  }
  func.func @transform_3(%arg0: i32) -> (i32, i32) {
    %c0_i32 = arith.constant 0 : i32
    %c0_i32_0 = arith.constant 0 : i32
    return %arg0, %c0_i32 : i32, i32
  }
}

module attributes {stable_mosaic.version = 11 : i64} {
  func.func @_linear_kernel(%arg0: i32, %arg1: i32, %arg2: i32, %arg3: memref<16x128xbf16, #tpu.memory_space<vmem>>, %arg4: memref<128x128xbf16, #tpu.memory_space<vmem>>, %arg5: memref<1x128xf32, #tpu.memory_space<vmem>>, %arg6: memref<16x128xbf16, #tpu.memory_space<vmem>>, %arg7: memref<16x128xf32, #tpu.memory_space<vmem>>) attributes {dimension_semantics = [#tpu.dimension_semantics<parallel>, #tpu.dimension_semantics<parallel>, #tpu.dimension_semantics<arbitrary>], iteration_bounds = array<i64: 2, 3, 1>, scalar_prefetch = 0 : i64, scratch_operands = 1 : i64, tpu.core_type = #tpu.core_type<tc>, window_params = [{transform_indices = @transform_0, window_bounds = array<i64: 16, 128>}, {transform_indices = @transform_1, window_bounds = array<i64: 128, 128>}, {transform_indices = @transform_2, window_bounds = array<i64: 1, 128>}, {transform_indices = @transform_3, window_bounds = array<i64: 16, 128>}]} {
    %c0_i32 = arith.constant 0 : i32
    %0 = arith.cmpi eq, %arg2, %c0_i32 : i32
    %1 = arith.extui %0 : i1 to i32
    %c0_i32_0 = arith.constant 0 : i32
    %2 = arith.cmpi ne, %1, %c0_i32_0 : i32
    scf.if %2 {
      %cst_10 = arith.constant 0.000000e+00 : f32
      %12 = vector.broadcast %cst_10 : f32 to vector<16x128xf32>
      %c0_11 = arith.constant 0 : index
      %c0_12 = arith.constant 0 : index
      %13 = vector.load %arg7[%c0_11, %c0_12] : memref<16x128xf32, #tpu.memory_space<vmem>>, vector<16x128xf32>
      tpu.vector_store %arg7[%c0_11, %c0_12], %12 {strides = array<i32>} : memref<16x128xf32, #tpu.memory_space<vmem>>, vector<16x128xf32>,
    } else {
    }
    %c0 = arith.constant 0 : index
    %c0_1 = arith.constant 0 : index
    %3 = vector.load %arg3[%c0, %c0_1] : memref<16x128xbf16, #tpu.memory_space<vmem>>, vector<16x128xbf16>
    %c0_2 = arith.constant 0 : index
    %c0_3 = arith.constant 0 : index
    %4 = vector.load %arg4[%c0_2, %c0_3] : memref<128x128xbf16, #tpu.memory_space<vmem>>, vector<128x128xbf16>
    %c0_4 = arith.constant 0 : index
    %c0_5 = arith.constant 0 : index
    %5 = vector.load %arg7[%c0_4, %c0_5] : memref<16x128xf32, #tpu.memory_space<vmem>>, vector<16x128xf32>
    %cst = arith.constant dense<0.000000e+00> : vector<16x128xf32>
    %6 = tpu.matmul %3, %4, %cst {dimension_numbers = #tpu.dot_dimension_numbers<[1], [0], [0], [1], [0, 0, 1, 1], [], []>} : vector<16x128xbf16>, vector<128x128xbf16>, vector<16x128xf32> -> vector<16x128xf32>
    %7 = arith.addf %5, %6 : vector<16x128xf32>
    %c0_6 = arith.constant 0 : index
    %c0_7 = arith.constant 0 : index
    %8 = vector.load %arg7[%c0_6, %c0_7] : memref<16x128xf32, #tpu.memory_space<vmem>>, vector<16x128xf32>
    tpu.vector_store %arg7[%c0_6, %c0_7], %7 {strides = array<i32>} : memref<16x128xf32, #tpu.memory_space<vmem>>, vector<16x128xf32>,
    %c0_i32_8 = arith.constant 0 : i32
    %9 = arith.cmpi eq, %arg2, %c0_i32_8 : i32
    %10 = arith.extui %9 : i1 to i32
    %c0_i32_9 = arith.constant 0 : i32
    %11 = arith.cmpi ne, %10, %c0_i32_9 : i32
    scf.if %11 {
      %c0_10 = arith.constant 0 : index
      %c0_11 = arith.constant 0 : index
      %12 = vector.load %arg7[%c0_10, %c0_11] : memref<16x128xf32, #tpu.memory_space<vmem>>, vector<16x128xf32>
      %c0_12 = arith.constant 0 : index
      %c0_13 = arith.constant 0 : index
      %13 = vector.load %arg5[%c0_12, %c0_13] : memref<1x128xf32, #tpu.memory_space<vmem>>, vector<1x128xf32>
      %14 = vector.broadcast %13 : vector<1x128xf32> to vector<16x128xf32>
      %15 = arith.addf %12, %14 : vector<16x128xf32>
      %16 = arith.truncf %15 : vector<16x128xf32> to vector<16x128xbf16>
      %c0_14 = arith.constant 0 : index
      %c0_15 = arith.constant 0 : index
      %17 = vector.load %arg6[%c0_14, %c0_15] : memref<16x128xbf16, #tpu.memory_space<vmem>>, vector<16x128xbf16>
      tpu.vector_store %arg6[%c0_14, %c0_15], %16 {strides = array<i32>} : memref<16x128xbf16, #tpu.memory_space<vmem>>, vector<16x128xbf16>,
    } else {
    }
    return
  }
  func.func @transform_0(%arg0: i32, %arg1: i32, %arg2: i32) -> (i32, i32) {
    %c0_i32 = arith.constant 0 : i32
    return %arg0, %arg2 : i32, i32
  }
  func.func @transform_1(%arg0: i32, %arg1: i32, %arg2: i32) -> (i32, i32) {
    %c0_i32 = arith.constant 0 : i32
    return %arg2, %arg1 : i32, i32
  }
  func.func @transform_2(%arg0: i32, %arg1: i32, %arg2: i32) -> (i32, i32) {
    %c0_i32 = arith.constant 0 : i32
    %c0_i32_0 = arith.constant 0 : i32
    return %c0_i32, %arg1 : i32, i32
  }
  func.func @transform_3(%arg0: i32, %arg1: i32, %arg2: i32) -> (i32, i32) {
    %c0_i32 = arith.constant 0 : i32
    return %arg0, %arg1 : i32, i32
  }
}

module attributes {stable_mosaic.version = 11 : i64} {
  func.func @_flash_attn_kernel(%arg0: i32, %arg1: i32, %arg2: i32, %arg3: i32, %arg4: memref<1x1x1x16x32xbf16, #tpu.memory_space<vmem>>, %arg5: memref<1x1x1x16x32xbf16, #tpu.memory_space<vmem>>, %arg6: memref<1x1x1x16x32xbf16, #tpu.memory_space<vmem>>, %arg7: memref<1x16x16xbf16, #tpu.memory_space<vmem>>, %arg8: memref<1x1x16x32xbf16, #tpu.memory_space<vmem>>, %arg9: memref<16x1xf32, #tpu.memory_space<vmem>>, %arg10: memref<16x1xf32, #tpu.memory_space<vmem>>, %arg11: memref<16x32xf32, #tpu.memory_space<vmem>>) attributes {dimension_semantics = [#tpu.dimension_semantics<parallel>, #tpu.dimension_semantics<parallel>, #tpu.dimension_semantics<parallel>, #tpu.dimension_semantics<arbitrary>], iteration_bounds = array<i64: 2, 4, 1, 1>, scalar_prefetch = 0 : i64, scratch_operands = 3 : i64, tpu.core_type = #tpu.core_type<tc>, window_params = [{transform_indices = @transform_0, window_bounds = array<i64: 1, 1, 1, 16, 32>}, {transform_indices = @transform_1, window_bounds = array<i64: 1, 1, 1, 16, 32>}, {transform_indices = @transform_2, window_bounds = array<i64: 1, 1, 1, 16, 32>}, {transform_indices = @transform_3, window_bounds = array<i64: 1, 16, 16>}, {transform_indices = @transform_4, window_bounds = array<i64: 1, 1, 16, 32>}]} {
    %c0_i32 = arith.constant 0 : i32
    %0 = arith.cmpi eq, %arg3, %c0_i32 : i32
    %1 = arith.extui %0 : i1 to i32
    %c0_i32_0 = arith.constant 0 : i32
    %2 = arith.cmpi ne, %1, %c0_i32_0 : i32
    scf.if %2 {
      %cst_36 = arith.constant -1.000000e+30 : f32
      %42 = vector.broadcast %cst_36 : f32 to vector<16x1xf32>
      %c0_37 = arith.constant 0 : index
      %c0_38 = arith.constant 0 : index
      %43 = vector.load %arg9[%c0_37, %c0_38] : memref<16x1xf32, #tpu.memory_space<vmem>>, vector<16x1xf32>
      tpu.vector_store %arg9[%c0_37, %c0_38], %42 {strides = array<i32>} : memref<16x1xf32, #tpu.memory_space<vmem>>, vector<16x1xf32>,
      %cst_39 = arith.constant 0.000000e+00 : f32
      %44 = vector.broadcast %cst_39 : f32 to vector<16x1xf32>
      %c0_40 = arith.constant 0 : index
      %c0_41 = arith.constant 0 : index
      %45 = vector.load %arg10[%c0_40, %c0_41] : memref<16x1xf32, #tpu.memory_space<vmem>>, vector<16x1xf32>
      tpu.vector_store %arg10[%c0_40, %c0_41], %44 {strides = array<i32>} : memref<16x1xf32, #tpu.memory_space<vmem>>, vector<16x1xf32>,
      %cst_42 = arith.constant 0.000000e+00 : f32
      %46 = vector.broadcast %cst_42 : f32 to vector<16x32xf32>
      %c0_43 = arith.constant 0 : index
      %c0_44 = arith.constant 0 : index
      %47 = vector.load %arg11[%c0_43, %c0_44] : memref<16x32xf32, #tpu.memory_space<vmem>>, vector<16x32xf32>
      tpu.vector_store %arg11[%c0_43, %c0_44], %46 {strides = array<i32>} : memref<16x32xf32, #tpu.memory_space<vmem>>, vector<16x32xf32>,
    } else {
    }
    %c0 = arith.constant 0 : index
    %c0_1 = arith.constant 0 : index
    %c0_2 = arith.constant 0 : index
    %c0_3 = arith.constant 0 : index
    %c0_4 = arith.constant 0 : index
    %3 = vector.load %arg4[%c0, %c0_1, %c0_2, %c0_3, %c0_4] : memref<1x1x1x16x32xbf16, #tpu.memory_space<vmem>>, vector<1x1x1x16x32xbf16>
    %4 = vector.shape_cast %3 : vector<1x1x1x16x32xbf16> to vector<16x32xbf16>
    %c0_5 = arith.constant 0 : index
    %c0_6 = arith.constant 0 : index
    %c0_7 = arith.constant 0 : index
    %c0_8 = arith.constant 0 : index
    %c0_9 = arith.constant 0 : index
    %5 = vector.load %arg5[%c0_5, %c0_6, %c0_7, %c0_8, %c0_9] : memref<1x1x1x16x32xbf16, #tpu.memory_space<vmem>>, vector<1x1x1x16x32xbf16>
    %6 = vector.shape_cast %5 : vector<1x1x1x16x32xbf16> to vector<16x32xbf16>
    %c0_10 = arith.constant 0 : index
    %c0_11 = arith.constant 0 : index
    %c0_12 = arith.constant 0 : index
    %c0_13 = arith.constant 0 : index
    %c0_14 = arith.constant 0 : index
    %7 = vector.load %arg6[%c0_10, %c0_11, %c0_12, %c0_13, %c0_14] : memref<1x1x1x16x32xbf16, #tpu.memory_space<vmem>>, vector<1x1x1x16x32xbf16>
    %8 = vector.shape_cast %7 : vector<1x1x1x16x32xbf16> to vector<16x32xbf16>
    %c0_15 = arith.constant 0 : index
    %c0_16 = arith.constant 0 : index
    %c0_17 = arith.constant 0 : index
    %9 = vector.load %arg7[%c0_15, %c0_16, %c0_17] : memref<1x16x16xbf16, #tpu.memory_space<vmem>>, vector<1x16x16xbf16>
    %10 = vector.shape_cast %9 : vector<1x16x16xbf16> to vector<16x16xbf16>
    %11 = arith.extf %10 : vector<16x16xbf16> to vector<16x16xf32>
    %cst = arith.constant dense<0.000000e+00> : vector<16x16xf32>
    %12 = tpu.matmul %4, %6, %cst {dimension_numbers = #tpu.dot_dimension_numbers<[1], [1], [0], [0], [0, 0, 1, 0], [], []>} : vector<16x32xbf16>, vector<16x32xbf16>, vector<16x16xf32> -> vector<16x16xf32>
    %cst_18 = arith.constant 0.176776692 : f32
    %13 = vector.broadcast %cst_18 : f32 to vector<16x16xf32>
    %14 = arith.mulf %12, %13 : vector<16x16xf32>
    %15 = arith.addf %14, %11 : vector<16x16xf32>
    %c0_19 = arith.constant 0 : index
    %c0_20 = arith.constant 0 : index
    %16 = vector.load %arg9[%c0_19, %c0_20] : memref<16x1xf32, #tpu.memory_space<vmem>>, vector<16x1xf32>
    %cst_21 = arith.constant dense<0xFF800000> : vector<16xf32>
    %17 = vector.multi_reduction <maximumf>, %15, %cst_21 [1] : vector<16x16xf32> to vector<16xf32>
    %18 = vector.shape_cast %17 : vector<16xf32> to vector<16x1xf32>
    %19 = arith.maximumf %16, %18 : vector<16x1xf32>
    %20 = arith.subf %16, %19 : vector<16x1xf32>
    %21 = math.exp %20 : vector<16x1xf32>
    %22 = vector.broadcast %19 : vector<16x1xf32> to vector<16x16xf32>
    %23 = arith.subf %15, %22 : vector<16x16xf32>
    %24 = math.exp %23 : vector<16x16xf32>
    %c0_22 = arith.constant 0 : index
    %c0_23 = arith.constant 0 : index
    %25 = vector.load %arg10[%c0_22, %c0_23] : memref<16x1xf32, #tpu.memory_space<vmem>>, vector<16x1xf32>
    %26 = arith.mulf %21, %25 : vector<16x1xf32>
    %cst_24 = arith.constant dense<0.000000e+00> : vector<16xf32>
    %27 = vector.multi_reduction <add>, %24, %cst_24 [1] : vector<16x16xf32> to vector<16xf32>
    %28 = vector.shape_cast %27 : vector<16xf32> to vector<16x1xf32>
    %29 = arith.addf %26, %28 : vector<16x1xf32>
    %c0_25 = arith.constant 0 : index
    %c0_26 = arith.constant 0 : index
    %30 = vector.load %arg10[%c0_25, %c0_26] : memref<16x1xf32, #tpu.memory_space<vmem>>, vector<16x1xf32>
    tpu.vector_store %arg10[%c0_25, %c0_26], %29 {strides = array<i32>} : memref<16x1xf32, #tpu.memory_space<vmem>>, vector<16x1xf32>,
    %c0_27 = arith.constant 0 : index
    %c0_28 = arith.constant 0 : index
    %31 = vector.load %arg9[%c0_27, %c0_28] : memref<16x1xf32, #tpu.memory_space<vmem>>, vector<16x1xf32>
    tpu.vector_store %arg9[%c0_27, %c0_28], %19 {strides = array<i32>} : memref<16x1xf32, #tpu.memory_space<vmem>>, vector<16x1xf32>,
    %c0_29 = arith.constant 0 : index
    %c0_30 = arith.constant 0 : index
    %32 = vector.load %arg11[%c0_29, %c0_30] : memref<16x32xf32, #tpu.memory_space<vmem>>, vector<16x32xf32>
    %33 = vector.broadcast %21 : vector<16x1xf32> to vector<16x32xf32>
    %34 = arith.mulf %33, %32 : vector<16x32xf32>
    %35 = arith.truncf %24 : vector<16x16xf32> to vector<16x16xbf16>
    %cst_31 = arith.constant dense<0.000000e+00> : vector<16x32xf32>
    %36 = tpu.matmul %35, %8, %cst_31 {dimension_numbers = #tpu.dot_dimension_numbers<[1], [0], [0], [1], [0, 0, 1, 1], [], []>} : vector<16x16xbf16>, vector<16x32xbf16>, vector<16x32xf32> -> vector<16x32xf32>
    %37 = arith.addf %34, %36 : vector<16x32xf32>
    %c0_32 = arith.constant 0 : index
    %c0_33 = arith.constant 0 : index
    %38 = vector.load %arg11[%c0_32, %c0_33] : memref<16x32xf32, #tpu.memory_space<vmem>>, vector<16x32xf32>
    tpu.vector_store %arg11[%c0_32, %c0_33], %37 {strides = array<i32>} : memref<16x32xf32, #tpu.memory_space<vmem>>, vector<16x32xf32>,
    %c0_i32_34 = arith.constant 0 : i32
    %39 = arith.cmpi eq, %arg3, %c0_i32_34 : i32
    %40 = arith.extui %39 : i1 to i32
    %c0_i32_35 = arith.constant 0 : i32
    %41 = arith.cmpi ne, %40, %c0_i32_35 : i32
    scf.if %41 {
      %c0_36 = arith.constant 0 : index
      %c0_37 = arith.constant 0 : index
      %42 = vector.load %arg11[%c0_36, %c0_37] : memref<16x32xf32, #tpu.memory_space<vmem>>, vector<16x32xf32>
      %c0_38 = arith.constant 0 : index
      %c0_39 = arith.constant 0 : index
      %43 = vector.load %arg10[%c0_38, %c0_39] : memref<16x1xf32, #tpu.memory_space<vmem>>, vector<16x1xf32>
      %44 = tpu.reciprocal %43 {approx = true} : vector<16x1xf32> -> vector<16x1xf32>
      %45 = vector.broadcast %44 : vector<16x1xf32> to vector<16x32xf32>
      %46 = arith.mulf %42, %45 : vector<16x32xf32>
      %47 = arith.truncf %46 : vector<16x32xf32> to vector<16x32xbf16>
      %c0_40 = arith.constant 0 : index
      %c0_41 = arith.constant 0 : index
      %c0_42 = arith.constant 0 : index
      %c0_43 = arith.constant 0 : index
      %48 = vector.load %arg8[%c0_40, %c0_41, %c0_42, %c0_43] : memref<1x1x16x32xbf16, #tpu.memory_space<vmem>>, vector<1x1x16x32xbf16>
      %49 = vector.shape_cast %48 : vector<1x1x16x32xbf16> to vector<16x32xbf16>
      %50 = vector.shape_cast %47 : vector<16x32xbf16> to vector<1x1x16x32xbf16>
      tpu.vector_store %arg8[%c0_40, %c0_41, %c0_42, %c0_43], %50 {strides = array<i32>} : memref<1x1x16x32xbf16, #tpu.memory_space<vmem>>, vector<1x1x16x32xbf16>,
    } else {
    }
    return
  }
  func.func @transform_0(%arg0: i32, %arg1: i32, %arg2: i32, %arg3: i32) -> (i32, i32, i32, i32, i32) {
    %c0_i32 = arith.constant 0 : i32
    %c0_i32_0 = arith.constant 0 : i32
    %c0_i32_1 = arith.constant 0 : i32
    return %c0_i32, %arg0, %arg1, %arg2, %c0_i32_0 : i32, i32, i32, i32, i32
  }
  func.func @transform_1(%arg0: i32, %arg1: i32, %arg2: i32, %arg3: i32) -> (i32, i32, i32, i32, i32) {
    %c1_i32 = arith.constant 1 : i32
    %c0_i32 = arith.constant 0 : i32
    %c0_i32_0 = arith.constant 0 : i32
    return %c1_i32, %arg0, %arg1, %arg3, %c0_i32 : i32, i32, i32, i32, i32
  }
  func.func @transform_2(%arg0: i32, %arg1: i32, %arg2: i32, %arg3: i32) -> (i32, i32, i32, i32, i32) {
    %c2_i32 = arith.constant 2 : i32
    %c0_i32 = arith.constant 0 : i32
    %c0_i32_0 = arith.constant 0 : i32
    return %c2_i32, %arg0, %arg1, %arg3, %c0_i32 : i32, i32, i32, i32, i32
  }
  func.func @transform_3(%arg0: i32, %arg1: i32, %arg2: i32, %arg3: i32) -> (i32, i32, i32) {
    %c0_i32 = arith.constant 0 : i32
    return %arg0, %arg2, %arg3 : i32, i32, i32
  }
  func.func @transform_4(%arg0: i32, %arg1: i32, %arg2: i32, %arg3: i32) -> (i32, i32, i32, i32) {
    %c0_i32 = arith.constant 0 : i32
    %c0_i32_0 = arith.constant 0 : i32
    return %arg0, %arg1, %arg2, %c0_i32 : i32, i32, i32, i32
  }
}

module attributes {stable_mosaic.version = 11 : i64} {
  func.func @_linear_kernel(%arg0: i32, %arg1: i32, %arg2: i32, %arg3: memref<16x128xbf16, #tpu.memory_space<vmem>>, %arg4: memref<128x128xbf16, #tpu.memory_space<vmem>>, %arg5: memref<1x128xf32, #tpu.memory_space<vmem>>, %arg6: memref<16x128xf32, #tpu.memory_space<vmem>>, %arg7: memref<16x128xf32, #tpu.memory_space<vmem>>, %arg8: memref<16x128xf32, #tpu.memory_space<vmem>>) attributes {dimension_semantics = [#tpu.dimension_semantics<parallel>, #tpu.dimension_semantics<parallel>, #tpu.dimension_semantics<arbitrary>], iteration_bounds = array<i64: 2, 1, 1>, scalar_prefetch = 0 : i64, scratch_operands = 1 : i64, tpu.core_type = #tpu.core_type<tc>, window_params = [{transform_indices = @transform_0, window_bounds = array<i64: 16, 128>}, {transform_indices = @transform_1, window_bounds = array<i64: 128, 128>}, {transform_indices = @transform_2, window_bounds = array<i64: 1, 128>}, {transform_indices = @transform_3, window_bounds = array<i64: 16, 128>}, {transform_indices = @transform_4, window_bounds = array<i64: 16, 128>}]} {
    %c0_i32 = arith.constant 0 : i32
    %0 = arith.cmpi eq, %arg2, %c0_i32 : i32
    %1 = arith.extui %0 : i1 to i32
    %c0_i32_0 = arith.constant 0 : i32
    %2 = arith.cmpi ne, %1, %c0_i32_0 : i32
    scf.if %2 {
      %cst_10 = arith.constant 0.000000e+00 : f32
      %12 = vector.broadcast %cst_10 : f32 to vector<16x128xf32>
      %c0_11 = arith.constant 0 : index
      %c0_12 = arith.constant 0 : index
      %13 = vector.load %arg8[%c0_11, %c0_12] : memref<16x128xf32, #tpu.memory_space<vmem>>, vector<16x128xf32>
      tpu.vector_store %arg8[%c0_11, %c0_12], %12 {strides = array<i32>} : memref<16x128xf32, #tpu.memory_space<vmem>>, vector<16x128xf32>,
    } else {
    }
    %c0 = arith.constant 0 : index
    %c0_1 = arith.constant 0 : index
    %3 = vector.load %arg3[%c0, %c0_1] : memref<16x128xbf16, #tpu.memory_space<vmem>>, vector<16x128xbf16>
    %c0_2 = arith.constant 0 : index
    %c0_3 = arith.constant 0 : index
    %4 = vector.load %arg4[%c0_2, %c0_3] : memref<128x128xbf16, #tpu.memory_space<vmem>>, vector<128x128xbf16>
    %c0_4 = arith.constant 0 : index
    %c0_5 = arith.constant 0 : index
    %5 = vector.load %arg8[%c0_4, %c0_5] : memref<16x128xf32, #tpu.memory_space<vmem>>, vector<16x128xf32>
    %cst = arith.constant dense<0.000000e+00> : vector<16x128xf32>
    %6 = tpu.matmul %3, %4, %cst {dimension_numbers = #tpu.dot_dimension_numbers<[1], [0], [0], [1], [0, 0, 1, 1], [], []>} : vector<16x128xbf16>, vector<128x128xbf16>, vector<16x128xf32> -> vector<16x128xf32>
    %7 = arith.addf %5, %6 : vector<16x128xf32>
    %c0_6 = arith.constant 0 : index
    %c0_7 = arith.constant 0 : index
    %8 = vector.load %arg8[%c0_6, %c0_7] : memref<16x128xf32, #tpu.memory_space<vmem>>, vector<16x128xf32>
    tpu.vector_store %arg8[%c0_6, %c0_7], %7 {strides = array<i32>} : memref<16x128xf32, #tpu.memory_space<vmem>>, vector<16x128xf32>,
    %c0_i32_8 = arith.constant 0 : i32
    %9 = arith.cmpi eq, %arg2, %c0_i32_8 : i32
    %10 = arith.extui %9 : i1 to i32
    %c0_i32_9 = arith.constant 0 : i32
    %11 = arith.cmpi ne, %10, %c0_i32_9 : i32
    scf.if %11 {
      %c0_10 = arith.constant 0 : index
      %c0_11 = arith.constant 0 : index
      %12 = vector.load %arg8[%c0_10, %c0_11] : memref<16x128xf32, #tpu.memory_space<vmem>>, vector<16x128xf32>
      %c0_12 = arith.constant 0 : index
      %c0_13 = arith.constant 0 : index
      %13 = vector.load %arg5[%c0_12, %c0_13] : memref<1x128xf32, #tpu.memory_space<vmem>>, vector<1x128xf32>
      %14 = vector.broadcast %13 : vector<1x128xf32> to vector<16x128xf32>
      %15 = arith.addf %12, %14 : vector<16x128xf32>
      %c0_14 = arith.constant 0 : index
      %c0_15 = arith.constant 0 : index
      %16 = vector.load %arg6[%c0_14, %c0_15] : memref<16x128xf32, #tpu.memory_space<vmem>>, vector<16x128xf32>
      %17 = arith.addf %15, %16 : vector<16x128xf32>
      %c0_16 = arith.constant 0 : index
      %c0_17 = arith.constant 0 : index
      %18 = vector.load %arg7[%c0_16, %c0_17] : memref<16x128xf32, #tpu.memory_space<vmem>>, vector<16x128xf32>
      tpu.vector_store %arg7[%c0_16, %c0_17], %17 {strides = array<i32>} : memref<16x128xf32, #tpu.memory_space<vmem>>, vector<16x128xf32>,
    } else {
    }
    return
  }
  func.func @transform_0(%arg0: i32, %arg1: i32, %arg2: i32) -> (i32, i32) {
    %c0_i32 = arith.constant 0 : i32
    return %arg0, %arg2 : i32, i32
  }
  func.func @transform_1(%arg0: i32, %arg1: i32, %arg2: i32) -> (i32, i32) {
    %c0_i32 = arith.constant 0 : i32
    return %arg2, %arg1 : i32, i32
  }
  func.func @transform_2(%arg0: i32, %arg1: i32, %arg2: i32) -> (i32, i32) {
    %c0_i32 = arith.constant 0 : i32
    %c0_i32_0 = arith.constant 0 : i32
    return %c0_i32, %arg1 : i32, i32
  }
  func.func @transform_3(%arg0: i32, %arg1: i32, %arg2: i32) -> (i32, i32) {
    %c0_i32 = arith.constant 0 : i32
    return %arg0, %arg1 : i32, i32
  }
  func.func @transform_4(%arg0: i32, %arg1: i32, %arg2: i32) -> (i32, i32) {
    %c0_i32 = arith.constant 0 : i32
    return %arg0, %arg1 : i32, i32
  }
}

module attributes {stable_mosaic.version = 11 : i64} {
  func.func @_linear_kernel(%arg0: i32, %arg1: i32, %arg2: i32, %arg3: memref<16x128xbf16, #tpu.memory_space<vmem>>, %arg4: memref<128x256xbf16, #tpu.memory_space<vmem>>, %arg5: memref<1x256xf32, #tpu.memory_space<vmem>>, %arg6: memref<16x256xbf16, #tpu.memory_space<vmem>>, %arg7: memref<16x256xf32, #tpu.memory_space<vmem>>) attributes {dimension_semantics = [#tpu.dimension_semantics<parallel>, #tpu.dimension_semantics<parallel>, #tpu.dimension_semantics<arbitrary>], iteration_bounds = array<i64: 2, 2, 1>, scalar_prefetch = 0 : i64, scratch_operands = 1 : i64, tpu.core_type = #tpu.core_type<tc>, window_params = [{transform_indices = @transform_0, window_bounds = array<i64: 16, 128>}, {transform_indices = @transform_1, window_bounds = array<i64: 128, 256>}, {transform_indices = @transform_2, window_bounds = array<i64: 1, 256>}, {transform_indices = @transform_3, window_bounds = array<i64: 16, 256>}]} {
    %c0_i32 = arith.constant 0 : i32
    %0 = arith.cmpi eq, %arg2, %c0_i32 : i32
    %1 = arith.extui %0 : i1 to i32
    %c0_i32_0 = arith.constant 0 : i32
    %2 = arith.cmpi ne, %1, %c0_i32_0 : i32
    scf.if %2 {
      %cst_10 = arith.constant 0.000000e+00 : f32
      %12 = vector.broadcast %cst_10 : f32 to vector<16x256xf32>
      %c0_11 = arith.constant 0 : index
      %c0_12 = arith.constant 0 : index
      %13 = vector.load %arg7[%c0_11, %c0_12] : memref<16x256xf32, #tpu.memory_space<vmem>>, vector<16x256xf32>
      tpu.vector_store %arg7[%c0_11, %c0_12], %12 {strides = array<i32>} : memref<16x256xf32, #tpu.memory_space<vmem>>, vector<16x256xf32>,
    } else {
    }
    %c0 = arith.constant 0 : index
    %c0_1 = arith.constant 0 : index
    %3 = vector.load %arg3[%c0, %c0_1] : memref<16x128xbf16, #tpu.memory_space<vmem>>, vector<16x128xbf16>
    %c0_2 = arith.constant 0 : index
    %c0_3 = arith.constant 0 : index
    %4 = vector.load %arg4[%c0_2, %c0_3] : memref<128x256xbf16, #tpu.memory_space<vmem>>, vector<128x256xbf16>
    %c0_4 = arith.constant 0 : index
    %c0_5 = arith.constant 0 : index
    %5 = vector.load %arg7[%c0_4, %c0_5] : memref<16x256xf32, #tpu.memory_space<vmem>>, vector<16x256xf32>
    %cst = arith.constant dense<0.000000e+00> : vector<16x256xf32>
    %6 = tpu.matmul %3, %4, %cst {dimension_numbers = #tpu.dot_dimension_numbers<[1], [0], [0], [1], [0, 0, 1, 1], [], []>} : vector<16x128xbf16>, vector<128x256xbf16>, vector<16x256xf32> -> vector<16x256xf32>
    %7 = arith.addf %5, %6 : vector<16x256xf32>
    %c0_6 = arith.constant 0 : index
    %c0_7 = arith.constant 0 : index
    %8 = vector.load %arg7[%c0_6, %c0_7] : memref<16x256xf32, #tpu.memory_space<vmem>>, vector<16x256xf32>
    tpu.vector_store %arg7[%c0_6, %c0_7], %7 {strides = array<i32>} : memref<16x256xf32, #tpu.memory_space<vmem>>, vector<16x256xf32>,
    %c0_i32_8 = arith.constant 0 : i32
    %9 = arith.cmpi eq, %arg2, %c0_i32_8 : i32
    %10 = arith.extui %9 : i1 to i32
    %c0_i32_9 = arith.constant 0 : i32
    %11 = arith.cmpi ne, %10, %c0_i32_9 : i32
    scf.if %11 {
      %c0_10 = arith.constant 0 : index
      %c0_11 = arith.constant 0 : index
      %12 = vector.load %arg7[%c0_10, %c0_11] : memref<16x256xf32, #tpu.memory_space<vmem>>, vector<16x256xf32>
      %c0_12 = arith.constant 0 : index
      %c0_13 = arith.constant 0 : index
      %13 = vector.load %arg5[%c0_12, %c0_13] : memref<1x256xf32, #tpu.memory_space<vmem>>, vector<1x256xf32>
      %14 = vector.broadcast %13 : vector<1x256xf32> to vector<16x256xf32>
      %15 = arith.addf %12, %14 : vector<16x256xf32>
      %cst_14 = arith.constant 5.000000e-01 : f32
      %16 = vector.broadcast %cst_14 : f32 to vector<16x256xf32>
      %17 = arith.mulf %16, %15 : vector<16x256xf32>
      %cst_15 = arith.constant 4.471500e-02 : f32
      %18 = vector.broadcast %cst_15 : f32 to vector<16x256xf32>
      %19 = arith.mulf %18, %15 : vector<16x256xf32>
      %20 = arith.mulf %19, %15 : vector<16x256xf32>
      %21 = arith.mulf %20, %15 : vector<16x256xf32>
      %22 = arith.addf %15, %21 : vector<16x256xf32>
      %cst_16 = arith.constant 0.797884583 : f32
      %23 = vector.broadcast %cst_16 : f32 to vector<16x256xf32>
      %24 = arith.mulf %23, %22 : vector<16x256xf32>
      %25 = math.tanh %24 : vector<16x256xf32>
      %cst_17 = arith.constant 1.000000e+00 : f32
      %26 = vector.broadcast %cst_17 : f32 to vector<16x256xf32>
      %27 = arith.addf %26, %25 : vector<16x256xf32>
      %28 = arith.mulf %17, %27 : vector<16x256xf32>
      %29 = arith.truncf %28 : vector<16x256xf32> to vector<16x256xbf16>
      %c0_18 = arith.constant 0 : index
      %c0_19 = arith.constant 0 : index
      %30 = vector.load %arg6[%c0_18, %c0_19] : memref<16x256xbf16, #tpu.memory_space<vmem>>, vector<16x256xbf16>
      tpu.vector_store %arg6[%c0_18, %c0_19], %29 {strides = array<i32>} : memref<16x256xbf16, #tpu.memory_space<vmem>>, vector<16x256xbf16>,
    } else {
    }
    return
  }
  func.func @transform_0(%arg0: i32, %arg1: i32, %arg2: i32) -> (i32, i32) {
    %c0_i32 = arith.constant 0 : i32
    return %arg0, %arg2 : i32, i32
  }
  func.func @transform_1(%arg0: i32, %arg1: i32, %arg2: i32) -> (i32, i32) {
    %c0_i32 = arith.constant 0 : i32
    return %arg2, %arg1 : i32, i32
  }
  func.func @transform_2(%arg0: i32, %arg1: i32, %arg2: i32) -> (i32, i32) {
    %c0_i32 = arith.constant 0 : i32
    %c0_i32_0 = arith.constant 0 : i32
    return %c0_i32, %arg1 : i32, i32
  }
  func.func @transform_3(%arg0: i32, %arg1: i32, %arg2: i32) -> (i32, i32) {
    %c0_i32 = arith.constant 0 : i32
    return %arg0, %arg1 : i32, i32
  }
}

module attributes {stable_mosaic.version = 11 : i64} {
  func.func @_layernorm_kernel(%arg0: i32, %arg1: memref<16x128xf32, #tpu.memory_space<vmem>>, %arg2: memref<1x128xf32, #tpu.memory_space<vmem>>, %arg3: memref<1x128xf32, #tpu.memory_space<vmem>>, %arg4: memref<16x128xf32, #tpu.memory_space<vmem>>) attributes {dimension_semantics = [#tpu.dimension_semantics<parallel>], iteration_bounds = array<i64: 2>, scalar_prefetch = 0 : i64, scratch_operands = 0 : i64, tpu.core_type = #tpu.core_type<tc>, window_params = [{transform_indices = @transform_0, window_bounds = array<i64: 16, 128>}, {pipeline_mode = #tpu.pipeline_mode<synchronous>, transform_indices = @transform_1, window_bounds = array<i64: 1, 128>}, {pipeline_mode = #tpu.pipeline_mode<synchronous>, transform_indices = @transform_2, window_bounds = array<i64: 1, 128>}, {transform_indices = @transform_3, window_bounds = array<i64: 16, 128>}]} {
    %c0 = arith.constant 0 : index
    %c0_0 = arith.constant 0 : index
    %0 = vector.load %arg1[%c0, %c0_0] : memref<16x128xf32, #tpu.memory_space<vmem>>, vector<16x128xf32>
    %cst = arith.constant dense<0.000000e+00> : vector<16xf32>
    %1 = vector.multi_reduction <add>, %0, %cst [1] : vector<16x128xf32> to vector<16xf32>
    %2 = vector.shape_cast %1 : vector<16xf32> to vector<16x1xf32>
    %cst_1 = arith.constant 1.280000e+02 : f32
    %3 = vector.broadcast %cst_1 : f32 to vector<16x1xf32>
    %4 = arith.divf %2, %3 : vector<16x1xf32>
    %5 = vector.broadcast %4 : vector<16x1xf32> to vector<16x128xf32>
    %6 = arith.subf %0, %5 : vector<16x128xf32>
    %7 = vector.broadcast %4 : vector<16x1xf32> to vector<16x128xf32>
    %8 = arith.subf %0, %7 : vector<16x128xf32>
    %9 = arith.mulf %6, %8 : vector<16x128xf32>
    %cst_2 = arith.constant dense<0.000000e+00> : vector<16xf32>
    %10 = vector.multi_reduction <add>, %9, %cst_2 [1] : vector<16x128xf32> to vector<16xf32>
    %11 = vector.shape_cast %10 : vector<16xf32> to vector<16x1xf32>
    %cst_3 = arith.constant 1.280000e+02 : f32
    %12 = vector.broadcast %cst_3 : f32 to vector<16x1xf32>
    %13 = arith.divf %11, %12 : vector<16x1xf32>
    %cst_4 = arith.constant 9.99999974E-6 : f32
    %14 = vector.broadcast %cst_4 : f32 to vector<16x1xf32>
    %15 = arith.addf %13, %14 : vector<16x1xf32>
    %16 = math.rsqrt %15 : vector<16x1xf32>
    %17 = vector.broadcast %4 : vector<16x1xf32> to vector<16x128xf32>
    %18 = arith.subf %0, %17 : vector<16x128xf32>
    %19 = vector.broadcast %16 : vector<16x1xf32> to vector<16x128xf32>
    %20 = arith.mulf %18, %19 : vector<16x128xf32>
    %c0_5 = arith.constant 0 : index
    %c0_6 = arith.constant 0 : index
    %21 = vector.load %arg2[%c0_5, %c0_6] : memref<1x128xf32, #tpu.memory_space<vmem>>, vector<1x128xf32>
    %22 = vector.broadcast %21 : vector<1x128xf32> to vector<16x128xf32>
    %23 = arith.mulf %20, %22 : vector<16x128xf32>
    %c0_7 = arith.constant 0 : index
    %c0_8 = arith.constant 0 : index
    %24 = vector.load %arg3[%c0_7, %c0_8] : memref<1x128xf32, #tpu.memory_space<vmem>>, vector<1x128xf32>
    %25 = vector.broadcast %24 : vector<1x128xf32> to vector<16x128xf32>
    %26 = arith.addf %23, %25 : vector<16x128xf32>
    %c0_9 = arith.constant 0 : index
    %c0_10 = arith.constant 0 : index
    %27 = vector.load %arg4[%c0_9, %c0_10] : memref<16x128xf32, #tpu.memory_space<vmem>>, vector<16x128xf32>
    tpu.vector_store %arg4[%c0_9, %c0_10], %26 {strides = array<i32>} : memref<16x128xf32, #tpu.memory_space<vmem>>, vector<16x128xf32>,
    return
  }
  func.func @transform_0(%arg0: i32) -> (i32, i32) {
    %c0_i32 = arith.constant 0 : i32
    %c0_i32_0 = arith.constant 0 : i32
    return %arg0, %c0_i32 : i32, i32
  }
  func.func @transform_1(%arg0: i32) -> (i32, i32) {
    %c0_i32 = arith.constant 0 : i32
    %c0_i32_0 = arith.constant 0 : i32
    %c0_i32_1 = arith.constant 0 : i32
    return %c0_i32, %c0_i32_0 : i32, i32
  }
  func.func @transform_2(%arg0: i32) -> (i32, i32) {
    %c0_i32 = arith.constant 0 : i32
    %c0_i32_0 = arith.constant 0 : i32
    %c0_i32_1 = arith.constant 0 : i32
    return %c0_i32, %c0_i32_0 : i32, i32
  }
  func.func @transform_3(%arg0: i32) -> (i32, i32) {
    %c0_i32 = arith.constant 0 : i32
    %c0_i32_0 = arith.constant 0 : i32
    return %arg0, %c0_i32 : i32, i32
  }
}

module attributes {stable_mosaic.version = 11 : i64} {
  func.func @_layernorm_kernel(%arg0: i32, %arg1: memref<16x128xf32, #tpu.memory_space<vmem>>, %arg2: memref<1x128xf32, #tpu.memory_space<vmem>>, %arg3: memref<1x128xf32, #tpu.memory_space<vmem>>, %arg4: memref<16x128xf32, #tpu.memory_space<vmem>>) attributes {dimension_semantics = [#tpu.dimension_semantics<parallel>], iteration_bounds = array<i64: 2>, scalar_prefetch = 0 : i64, scratch_operands = 0 : i64, tpu.core_type = #tpu.core_type<tc>, window_params = [{transform_indices = @transform_0, window_bounds = array<i64: 16, 128>}, {pipeline_mode = #tpu.pipeline_mode<synchronous>, transform_indices = @transform_1, window_bounds = array<i64: 1, 128>}, {pipeline_mode = #tpu.pipeline_mode<synchronous>, transform_indices = @transform_2, window_bounds = array<i64: 1, 128>}, {transform_indices = @transform_3, window_bounds = array<i64: 16, 128>}]} {
    %c0 = arith.constant 0 : index
    %c0_0 = arith.constant 0 : index
    %0 = vector.load %arg1[%c0, %c0_0] : memref<16x128xf32, #tpu.memory_space<vmem>>, vector<16x128xf32>
    %cst = arith.constant dense<0.000000e+00> : vector<16xf32>
    %1 = vector.multi_reduction <add>, %0, %cst [1] : vector<16x128xf32> to vector<16xf32>
    %2 = vector.shape_cast %1 : vector<16xf32> to vector<16x1xf32>
    %cst_1 = arith.constant 1.280000e+02 : f32
    %3 = vector.broadcast %cst_1 : f32 to vector<16x1xf32>
    %4 = arith.divf %2, %3 : vector<16x1xf32>
    %5 = vector.broadcast %4 : vector<16x1xf32> to vector<16x128xf32>
    %6 = arith.subf %0, %5 : vector<16x128xf32>
    %7 = vector.broadcast %4 : vector<16x1xf32> to vector<16x128xf32>
    %8 = arith.subf %0, %7 : vector<16x128xf32>
    %9 = arith.mulf %6, %8 : vector<16x128xf32>
    %cst_2 = arith.constant dense<0.000000e+00> : vector<16xf32>
    %10 = vector.multi_reduction <add>, %9, %cst_2 [1] : vector<16x128xf32> to vector<16xf32>
    %11 = vector.shape_cast %10 : vector<16xf32> to vector<16x1xf32>
    %cst_3 = arith.constant 1.280000e+02 : f32
    %12 = vector.broadcast %cst_3 : f32 to vector<16x1xf32>
    %13 = arith.divf %11, %12 : vector<16x1xf32>
    %cst_4 = arith.constant 9.99999974E-6 : f32
    %14 = vector.broadcast %cst_4 : f32 to vector<16x1xf32>
    %15 = arith.addf %13, %14 : vector<16x1xf32>
    %16 = math.rsqrt %15 : vector<16x1xf32>
    %17 = vector.broadcast %4 : vector<16x1xf32> to vector<16x128xf32>
    %18 = arith.subf %0, %17 : vector<16x128xf32>
    %19 = vector.broadcast %16 : vector<16x1xf32> to vector<16x128xf32>
    %20 = arith.mulf %18, %19 : vector<16x128xf32>
    %c0_5 = arith.constant 0 : index
    %c0_6 = arith.constant 0 : index
    %21 = vector.load %arg2[%c0_5, %c0_6] : memref<1x128xf32, #tpu.memory_space<vmem>>, vector<1x128xf32>
    %22 = vector.broadcast %21 : vector<1x128xf32> to vector<16x128xf32>
    %23 = arith.mulf %20, %22 : vector<16x128xf32>
    %c0_7 = arith.constant 0 : index
    %c0_8 = arith.constant 0 : index
    %24 = vector.load %arg3[%c0_7, %c0_8] : memref<1x128xf32, #tpu.memory_space<vmem>>, vector<1x128xf32>
    %25 = vector.broadcast %24 : vector<1x128xf32> to vector<16x128xf32>
    %26 = arith.addf %23, %25 : vector<16x128xf32>
    %c0_9 = arith.constant 0 : index
    %c0_10 = arith.constant 0 : index
    %27 = vector.load %arg4[%c0_9, %c0_10] : memref<16x128xf32, #tpu.memory_space<vmem>>, vector<16x128xf32>
    tpu.vector_store %arg4[%c0_9, %c0_10], %26 {strides = array<i32>} : memref<16x128xf32, #tpu.memory_space<vmem>>, vector<16x128xf32>,
    return
  }
  func.func @transform_0(%arg0: i32) -> (i32, i32) {
    %c0_i32 = arith.constant 0 : i32
    %c0_i32_0 = arith.constant 0 : i32
    return %arg0, %c0_i32 : i32, i32
  }
  func.func @transform_1(%arg0: i32) -> (i32, i32) {
    %c0_i32 = arith.constant 0 : i32
    %c0_i32_0 = arith.constant 0 : i32
    %c0_i32_1 = arith.constant 0 : i32
    return %c0_i32, %c0_i32_0 : i32, i32
  }
  func.func @transform_2(%arg0: i32) -> (i32, i32) {
    %c0_i32 = arith.constant 0 : i32
    %c0_i32_0 = arith.constant 0 : i32
    %c0_i32_1 = arith.constant 0 : i32
    return %c0_i32, %c0_i32_0 : i32, i32
  }
  func.func @transform_3(%arg0: i32) -> (i32, i32) {
    %c0_i32 = arith.constant 0 : i32
    %c0_i32_0 = arith.constant 0 : i32
    return %arg0, %c0_i32 : i32, i32
  }
}

module attributes {stable_mosaic.version = 11 : i64} {
  func.func @_linear_kernel(%arg0: i32, %arg1: i32, %arg2: i32, %arg3: memref<16x512xbf16, #tpu.memory_space<vmem>>, %arg4: memref<512x128xbf16, #tpu.memory_space<vmem>>, %arg5: memref<1x128xf32, #tpu.memory_space<vmem>>, %arg6: memref<16x128xf32, #tpu.memory_space<vmem>>, %arg7: memref<16x128xf32, #tpu.memory_space<vmem>>, %arg8: memref<16x128xf32, #tpu.memory_space<vmem>>) attributes {dimension_semantics = [#tpu.dimension_semantics<parallel>, #tpu.dimension_semantics<parallel>, #tpu.dimension_semantics<arbitrary>], iteration_bounds = array<i64: 2, 1, 1>, scalar_prefetch = 0 : i64, scratch_operands = 1 : i64, tpu.core_type = #tpu.core_type<tc>, window_params = [{transform_indices = @transform_0, window_bounds = array<i64: 16, 512>}, {transform_indices = @transform_1, window_bounds = array<i64: 512, 128>}, {transform_indices = @transform_2, window_bounds = array<i64: 1, 128>}, {transform_indices = @transform_3, window_bounds = array<i64: 16, 128>}, {transform_indices = @transform_4, window_bounds = array<i64: 16, 128>}]} {
    %c0_i32 = arith.constant 0 : i32
    %0 = arith.cmpi eq, %arg2, %c0_i32 : i32
    %1 = arith.extui %0 : i1 to i32
    %c0_i32_0 = arith.constant 0 : i32
    %2 = arith.cmpi ne, %1, %c0_i32_0 : i32
    scf.if %2 {
      %cst_10 = arith.constant 0.000000e+00 : f32
      %12 = vector.broadcast %cst_10 : f32 to vector<16x128xf32>
      %c0_11 = arith.constant 0 : index
      %c0_12 = arith.constant 0 : index
      %13 = vector.load %arg8[%c0_11, %c0_12] : memref<16x128xf32, #tpu.memory_space<vmem>>, vector<16x128xf32>
      tpu.vector_store %arg8[%c0_11, %c0_12], %12 {strides = array<i32>} : memref<16x128xf32, #tpu.memory_space<vmem>>, vector<16x128xf32>,
    } else {
    }
    %c0 = arith.constant 0 : index
    %c0_1 = arith.constant 0 : index
    %3 = vector.load %arg3[%c0, %c0_1] : memref<16x512xbf16, #tpu.memory_space<vmem>>, vector<16x512xbf16>
    %c0_2 = arith.constant 0 : index
    %c0_3 = arith.constant 0 : index
    %4 = vector.load %arg4[%c0_2, %c0_3] : memref<512x128xbf16, #tpu.memory_space<vmem>>, vector<512x128xbf16>
    %c0_4 = arith.constant 0 : index
    %c0_5 = arith.constant 0 : index
    %5 = vector.load %arg8[%c0_4, %c0_5] : memref<16x128xf32, #tpu.memory_space<vmem>>, vector<16x128xf32>
    %cst = arith.constant dense<0.000000e+00> : vector<16x128xf32>
    %6 = tpu.matmul %3, %4, %cst {dimension_numbers = #tpu.dot_dimension_numbers<[1], [0], [0], [1], [0, 0, 1, 1], [], []>} : vector<16x512xbf16>, vector<512x128xbf16>, vector<16x128xf32> -> vector<16x128xf32>
    %7 = arith.addf %5, %6 : vector<16x128xf32>
    %c0_6 = arith.constant 0 : index
    %c0_7 = arith.constant 0 : index
    %8 = vector.load %arg8[%c0_6, %c0_7] : memref<16x128xf32, #tpu.memory_space<vmem>>, vector<16x128xf32>
    tpu.vector_store %arg8[%c0_6, %c0_7], %7 {strides = array<i32>} : memref<16x128xf32, #tpu.memory_space<vmem>>, vector<16x128xf32>,
    %c0_i32_8 = arith.constant 0 : i32
    %9 = arith.cmpi eq, %arg2, %c0_i32_8 : i32
    %10 = arith.extui %9 : i1 to i32
    %c0_i32_9 = arith.constant 0 : i32
    %11 = arith.cmpi ne, %10, %c0_i32_9 : i32
    scf.if %11 {
      %c0_10 = arith.constant 0 : index
      %c0_11 = arith.constant 0 : index
      %12 = vector.load %arg8[%c0_10, %c0_11] : memref<16x128xf32, #tpu.memory_space<vmem>>, vector<16x128xf32>
      %c0_12 = arith.constant 0 : index
      %c0_13 = arith.constant 0 : index
      %13 = vector.load %arg5[%c0_12, %c0_13] : memref<1x128xf32, #tpu.memory_space<vmem>>, vector<1x128xf32>
      %14 = vector.broadcast %13 : vector<1x128xf32> to vector<16x128xf32>
      %15 = arith.addf %12, %14 : vector<16x128xf32>
      %c0_14 = arith.constant 0 : index
      %c0_15 = arith.constant 0 : index
      %16 = vector.load %arg6[%c0_14, %c0_15] : memref<16x128xf32, #tpu.memory_space<vmem>>, vector<16x128xf32>
      %17 = arith.addf %15, %16 : vector<16x128xf32>
      %c0_16 = arith.constant 0 : index
      %c0_17 = arith.constant 0 : index
      %18 = vector.load %arg7[%c0_16, %c0_17] : memref<16x128xf32, #tpu.memory_space<vmem>>, vector<16x128xf32>
      tpu.vector_store %arg7[%c0_16, %c0_17], %17 {strides = array<i32>} : memref<16x128xf32, #tpu.memory_space<vmem>>, vector<16x128xf32>,
    } else {
    }
    return
  }
  func.func @transform_0(%arg0: i32, %arg1: i32, %arg2: i32) -> (i32, i32) {
    %c0_i32 = arith.constant 0 : i32
    return %arg0, %arg2 : i32, i32
  }
  func.func @transform_1(%arg0: i32, %arg1: i32, %arg2: i32) -> (i32, i32) {
    %c0_i32 = arith.constant 0 : i32
    return %arg2, %arg1 : i32, i32
  }
  func.func @transform_2(%arg0: i32, %arg1: i32, %arg2: i32) -> (i32, i32) {
    %c0_i32 = arith.constant 0 : i32
    %c0_i32_0 = arith.constant 0 : i32
    return %c0_i32, %arg1 : i32, i32
  }
  func.func @transform_3(%arg0: i32, %arg1: i32, %arg2: i32) -> (i32, i32) {
    %c0_i32 = arith.constant 0 : i32
    return %arg0, %arg1 : i32, i32
  }
  func.func @transform_4(%arg0: i32, %arg1: i32, %arg2: i32) -> (i32, i32) {
    %c0_i32 = arith.constant 0 : i32
    return %arg0, %arg1 : i32, i32
  }
}

module attributes {stable_mosaic.version = 11 : i64} {
  func.func @_linear_kernel(%arg0: i32, %arg1: i32, %arg2: i32, %arg3: memref<16x128xf32, #tpu.memory_space<vmem>>, %arg4: memref<128x128xbf16, #tpu.memory_space<vmem>>, %arg5: memref<1x128xf32, #tpu.memory_space<vmem>>, %arg6: memref<16x128xf32, #tpu.memory_space<vmem>>, %arg7: memref<16x128xf32, #tpu.memory_space<vmem>>) attributes {dimension_semantics = [#tpu.dimension_semantics<parallel>, #tpu.dimension_semantics<parallel>, #tpu.dimension_semantics<arbitrary>], iteration_bounds = array<i64: 2, 2, 1>, scalar_prefetch = 0 : i64, scratch_operands = 1 : i64, tpu.core_type = #tpu.core_type<tc>, window_params = [{transform_indices = @transform_0, window_bounds = array<i64: 16, 128>}, {transform_indices = @transform_1, window_bounds = array<i64: 128, 128>}, {transform_indices = @transform_2, window_bounds = array<i64: 1, 128>}, {transform_indices = @transform_3, window_bounds = array<i64: 16, 128>}]} {
    %c0_i32 = arith.constant 0 : i32
    %0 = arith.cmpi eq, %arg2, %c0_i32 : i32
    %1 = arith.extui %0 : i1 to i32
    %c0_i32_0 = arith.constant 0 : i32
    %2 = arith.cmpi ne, %1, %c0_i32_0 : i32
    scf.if %2 {
      %cst_10 = arith.constant 0.000000e+00 : f32
      %13 = vector.broadcast %cst_10 : f32 to vector<16x128xf32>
      %c0_11 = arith.constant 0 : index
      %c0_12 = arith.constant 0 : index
      %14 = vector.load %arg7[%c0_11, %c0_12] : memref<16x128xf32, #tpu.memory_space<vmem>>, vector<16x128xf32>
      tpu.vector_store %arg7[%c0_11, %c0_12], %13 {strides = array<i32>} : memref<16x128xf32, #tpu.memory_space<vmem>>, vector<16x128xf32>,
    } else {
    }
    %c0 = arith.constant 0 : index
    %c0_1 = arith.constant 0 : index
    %3 = vector.load %arg3[%c0, %c0_1] : memref<16x128xf32, #tpu.memory_space<vmem>>, vector<16x128xf32>
    %4 = arith.truncf %3 : vector<16x128xf32> to vector<16x128xbf16>
    %c0_2 = arith.constant 0 : index
    %c0_3 = arith.constant 0 : index
    %5 = vector.load %arg4[%c0_2, %c0_3] : memref<128x128xbf16, #tpu.memory_space<vmem>>, vector<128x128xbf16>
    %c0_4 = arith.constant 0 : index
    %c0_5 = arith.constant 0 : index
    %6 = vector.load %arg7[%c0_4, %c0_5] : memref<16x128xf32, #tpu.memory_space<vmem>>, vector<16x128xf32>
    %cst = arith.constant dense<0.000000e+00> : vector<16x128xf32>
    %7 = tpu.matmul %4, %5, %cst {dimension_numbers = #tpu.dot_dimension_numbers<[1], [1], [0], [0], [0, 0, 1, 0], [], []>} : vector<16x128xbf16>, vector<128x128xbf16>, vector<16x128xf32> -> vector<16x128xf32>
    %8 = arith.addf %6, %7 : vector<16x128xf32>
    %c0_6 = arith.constant 0 : index
    %c0_7 = arith.constant 0 : index
    %9 = vector.load %arg7[%c0_6, %c0_7] : memref<16x128xf32, #tpu.memory_space<vmem>>, vector<16x128xf32>
    tpu.vector_store %arg7[%c0_6, %c0_7], %8 {strides = array<i32>} : memref<16x128xf32, #tpu.memory_space<vmem>>, vector<16x128xf32>,
    %c0_i32_8 = arith.constant 0 : i32
    %10 = arith.cmpi eq, %arg2, %c0_i32_8 : i32
    %11 = arith.extui %10 : i1 to i32
    %c0_i32_9 = arith.constant 0 : i32
    %12 = arith.cmpi ne, %11, %c0_i32_9 : i32
    scf.if %12 {
      %c0_10 = arith.constant 0 : index
      %c0_11 = arith.constant 0 : index
      %13 = vector.load %arg7[%c0_10, %c0_11] : memref<16x128xf32, #tpu.memory_space<vmem>>, vector<16x128xf32>
      %c0_12 = arith.constant 0 : index
      %c0_13 = arith.constant 0 : index
      %14 = vector.load %arg5[%c0_12, %c0_13] : memref<1x128xf32, #tpu.memory_space<vmem>>, vector<1x128xf32>
      %15 = vector.broadcast %14 : vector<1x128xf32> to vector<16x128xf32>
      %16 = arith.addf %13, %15 : vector<16x128xf32>
      %c0_14 = arith.constant 0 : index
      %c0_15 = arith.constant 0 : index
      %17 = vector.load %arg6[%c0_14, %c0_15] : memref<16x128xf32, #tpu.memory_space<vmem>>, vector<16x128xf32>
      tpu.vector_store %arg6[%c0_14, %c0_15], %16 {strides = array<i32>} : memref<16x128xf32, #tpu.memory_space<vmem>>, vector<16x128xf32>,
    } else {
    }
    return
  }
  func.func @transform_0(%arg0: i32, %arg1: i32, %arg2: i32) -> (i32, i32) {
    %c0_i32 = arith.constant 0 : i32
    return %arg0, %arg2 : i32, i32
  }
  func.func @transform_1(%arg0: i32, %arg1: i32, %arg2: i32) -> (i32, i32) {
    %c0_i32 = arith.constant 0 : i32
    return %arg1, %arg2 : i32, i32
  }
  func.func @transform_2(%arg0: i32, %arg1: i32, %arg2: i32) -> (i32, i32) {
    %c0_i32 = arith.constant 0 : i32
    %c0_i32_0 = arith.constant 0 : i32
    return %c0_i32, %arg1 : i32, i32
  }
  func.func @transform_3(%arg0: i32, %arg1: i32, %arg2: i32) -> (i32, i32) {
    %c0_i32 = arith.constant 0 : i32
    return %arg0, %arg1 : i32, i32
  }
}

</mosaic_0001>

<bundles_post_ra>
// kernel: encoder_decoder_forward.33
= control target key start
LH: loop header
LB: loop body
LE: loop exit
PB: predicated region body
PF: predicated region fallthrough
CT: control target
= control target key end

     0   :  { %s1042_s15 = smov 0   ;;  %s1044_s16 = smov 0   ;;  %s1127_s0 = inlined_call_operand.vmem [shape: bf16[3,2,4,16,32], index: 0, kind: input, shape index: {}, may-alias: {0,1,2}]   ;;  %s1128_s1 = inlined_call_operand.vmem [shape: bf16[3,2,4,16,32], index: 1, kind: input, shape index: {}, may-alias: {0,1,2}]   ;;  %s1129_s2 = inlined_call_operand.vmem [shape: bf16[3,2,4,16,32], index: 2, kind: input, shape index: {}, may-alias: {0,1,2}]   ;;  %s1130_s3 = inlined_call_operand.vmem [shape: bf16[2,16,16], index: 3, kind: input, shape index: {}]   ;;  %s1131_s4 = inlined_call_operand.vmem [shape: bf16[2,4,16,32], index: 4, kind: output, shape index: {}]  }
   0x1   :  { %s1046_s17 = smov 0   ;;  %s1048_s18 = smov 0  }
   0x2   :  { %s1050_s19 = smov 0  }
   0x3 LB: > { %s36_s20 = sadd.s32 1, %s1003_s17  ;;  %s40_s21 = sadd.s32 1, %s1007_s18  ;;  %s1011_s19 = sphi %s1050_s19, %s14_s19   ;;  %s1007_s18 = sphi %s1048_s18, %s1135_s18   ;;  %s1003_s17 = sphi %s1046_s17, %s1134_s17   ;;  %s999_s16 = sphi %s1044_s16, %s1133_s16   ;;  %s995_s15 = sphi %s1042_s15, %s1132_s15  }
   0x4   : > { %p38_p0 = scmp.ge.s32.totalorder %s36_s20, 4  ;;  %p861_p1 = scmp.ge.s32.totalorder %s1011_s19, 1 }
   0x5   : > { %p275_p2 = scmp.lt.s32.totalorder %s1011_s19, 9 }
   0x6   : > { %s1137_s20 = smov (%p38_p0, %s36_s20), 0  ;;  %s1139_s21 = smov (!%p38_p0, %s40_s21), %s1007_s18 }
   0x7   : > { %p276_p3 = pnand %p861_p1, %p275_p2  ;;  %p42_p4 = scmp.ge.s32.totalorder %s1139_s21, 2 }
   0x8   : > { %p358_p5 = scmp.lt.s32.totalorder (!%p276_p3), %s999_s16, 1  ;;  %p360_p6 = scmp.lt.s32.totalorder (!%p276_p3), %s995_s15, 3  ;;  %vm438_vm0 = vcmask (!%p276_p3), 261120   ;;  %v1013_v0 = vmov (!%p276_p3), 0.0   ;;  %vm1014_vm1 = vmmov (!%p276_p3), 0   ;;  %vm433_vm2 = vcmask (!%p276_p3), 7168  }
   0x9   : > { %s1141_s21 = smov (%p42_p4, %s1139_s21), 0  ;;  %279 = sbr.rel (%p276_p3) target bundleno = 835 (0x343), region = 36 }
   0xa   : > { %900 = vmatprep.subr.bf16.mxu0 (!%p276_p3), %v1013_v0  ;;  %439 = vst.msk [vmem:[#allocation4] sm:$0xff] (!%p276_p3), %vm438_vm0, %v1013_v0  ;;  %440 = vst.msk [vmem:[#allocation4 + $0x8] sm:$0xff] (!%p276_p3), %vm438_vm0, %v1013_v0  ;;  %902 = vmatprep.mubr.msk.bf16.mxu0 (!%p276_p3), %vm1014_vm1, %v1013_v0  ;;  %v1015_v4 = vmov (!%p276_p3), -1e+30   ;;  %vm515_vm3 = vcmask (!%p276_p3), 130048   ;;  %v1016_v18 = vmov (!%p276_p3), 0  }
   0xb   : > { %906 = vmatprep.subr.bf16.mxu1 (!%p276_p3), %v1013_v0  ;;  %908 = vmatprep.mubr.msk.bf16.mxu1 (!%p276_p3), %vm1014_vm1, %v1013_v0  ;;  %434 = vst.msk [vmem:[#allocation2] sm:$0xff] (!%p276_p3), %vm433_vm2, %v1015_v4  ;;  %435 = vst.msk [vmem:[#allocation2 + $0x8] sm:$0xff] (!%p276_p3), %vm433_vm2, %v1015_v4  ;;  %vm661_vm4 = vcmask (!%p276_p3), 257024  }
   0xc   : > { %436 = vst.msk [vmem:[#allocation3] sm:$0xff] (!%p276_p3), %vm433_vm2, %v1013_v0  ;;  %437 = vst.msk [vmem:[#allocation3 + $0x8] sm:$0xff] (!%p276_p3), %vm433_vm2, %v1013_v0  ;;  %956 = vset.pattern.permute.xlu1 (!%p276_p3), %v1016_v18  ;;  %957 = vset.pattern.permute.xlu0 (!%p276_p3), %v1016_v18 }
  0x10   : > { %s1143_s16 = smov (!%p358_p5, %s999_s16), 1  ;;  %s1145_s15 = smov (!%p360_p6, %s995_s15), 3 }
  0x11   : > { %s863_s22 = sshll.u32 %s1143_s16, 3  ;;  %s862_s23 = sshll.u32 %s1145_s15, 1  ;;  %v563_v55 = vld [vmem:[#allocation4] sm:$0xff]  ;;  %v564_v57 = vld [vmem:[#allocation4 + $0x8] sm:$0xff] }
  0x12   : > { %s367_s24 = sadd.s32 %s863_s22, %s862_s23  ;;  %s412_s8 = scalar_lea.vmem %s1130_s3, %s863_s22  ;;  %v513_v19 = vld [vmem:[#allocation2] sm:$0xff]  ;;  %v514_v22 = vld [vmem:[#allocation2 + $0x8] sm:$0xff] }
  0x13   : > { %s1074_s25 = sshll.u32 %s367_s24, 2  ;;  %v893_v5 = vld [vmem:[%s412_s8] sm:$0xff]   ;;  %v546_v43 = vld [vmem:[#allocation3] sm:$0xff]  ;;  %v547_v46 = vld [vmem:[#allocation3 + $0x8] sm:$0xff] }
  0x14   : > { %s769_s28 = scalar_lea.vmem %s1128_s1, %s1074_s25  ;;  %s369_s5 = scalar_lea.vmem %s1127_s0, %s1074_s25  ;;  %v894_v6 = vunpack.c.l.bf16 %v893_v5  ;;  %v895_v10 = vunpack.c.h.bf16 %v893_v5 }
  0x15   : > { %v958_v1 = vld [vmem:[%s769_s28 + $0x40] sm:$0xff]   ;;  %s776_s11 = scalar_lea.vmem %s1129_s2, %s1074_s25  ;;  %s426_s14 = scalar_lea.vmem %s1131_s4, %s1074_s25 }
  0x16   : > { %v466_v2 = vsel %vm438_vm0, %v958_v1, 0  ;;  %v959_v3 = vld [vmem:[%s369_s5] sm:$0xff]  }
  0x17   : > { %901 = vmatpush3.bf16.xpose.msra.mxu0 %v466_v2  ;;  %v960_v27 = vld [vmem:[%s776_s11 + $0x80] sm:$0xff]  }
  0x18   : > { %907 = vmatpush3.bf16.msra.mxu1 %v960_v27 }
  0x1e   : > { %903 = vmatmul.mubr.msk.bf16.vlgmr.msra.gmra.mrb[0].mxu0 %vm438_vm0, %v959_v3 }
  0xf1   : > { %v502_v7 = vpop.f32.mrb[0].mxu0 }
  0xf2   : > { %v509_v8 = vmul.f32 0.17677669, %v502_v7  ;;  %v904_v9 = vpop.f32.mrb[1].mxu0 }
  0xf3   : > { %v505_v11 = vpop.f32.mrb[2].mxu0 }
  0xf4   : > { %v510_v12 = vmul.f32 0.17677669, %v505_v11  ;;  %v905_v13 = vpop.f32.mrb[3].mxu0  ;;  %v511_v14 = vadd.f32 %v894_v6, %v509_v8 }
  0xf6   : > { %v516_v15 = vsel %vm515_vm3, %v511_v14, -inf  ;;  %v512_v16 = vadd.f32 %v895_v10, %v510_v12 }
  0xf7   : > { %517 = vmax.xlane.f32.xlu0 %v516_v15 }
  0xf8   : > { %v519_v17 = vsel %vm515_vm3, %v512_v16, -inf }
  0xfb   : > { %520 = vmax.xlane.f32.xlu0 %v519_v17 }
 0x184   : > { %v518_v20 = vpop.xlane.xlu0 %517 }
 0x185   : > { %v522_v21 = vmax.f32 %v513_v19, %v518_v20 }
 0x187   : > { %v524_v23 = vsub.f32 %v513_v19, %v522_v21  ;;  %561 = vst.msk [vmem:[#allocation2] sm:$0xff] %vm433_vm2, %v522_v21  ;;  %532 = vperm.xlu1 %956, %v522_v21  }
 0x188   : > { %v521_v24 = vpop.xlane.xlu0 %520 }
 0x189   : > { %v523_v25 = vmax.f32 %v514_v22, %v521_v24  ;;  %v526_v40 = vmul.f32 1.442695, %v524_v23 }
 0x18b   : > { %v525_v26 = vsub.f32 %v514_v22, %v523_v25  ;;  %562 = vst.msk [vmem:[#allocation2 + $0x8] sm:$0xff] %vm433_vm2, %v523_v25  ;;  %537 = vperm.xlu1 %956, %v523_v25  }
 0x18d   : > { %v528_v39 = vmul.f32 1.442695, %v525_v26 }
 0x206   : > { %v533_v28 = vpop.permute.xlu1 %532 }
 0x207   : > { %v540_v29 = vsub.f32 %v511_v14, %v533_v28 }
 0x209   : > { %v542_v30 = vmul.f32 1.442695, %v540_v29 }
 0x20a   : > { %v538_v31 = vpop.permute.xlu1 %537 }
 0x20b   : > { %961 = vpow2.f32 %v542_v30  ;;  %v541_v32 = vsub.f32 %v512_v16, %v538_v31 }
 0x20d   : > { %v544_v33 = vmul.f32 1.442695, %v541_v32 }
 0x20f   : > { %963 = vpow2.f32 %v544_v33 }
 0x210   : > { %965 = vpow2.f32 %v528_v39 }
 0x211   : > { %967 = vpow2.f32 %v526_v40 }
 0x215   : > { %v962_v34 = vpop.eup %961 }
 0x216   : > { %v550_v35 = vsel %vm515_vm3, %v962_v34, 0.0 }
 0x217   : > { %551 = vadd.xlane.f32.xlu0 %v550_v35 }
 0x219   : > { %v964_v36 = vpop.eup %963 }
 0x21a   : > { %v553_v37 = vsel %vm515_vm3, %v964_v36, 0.0  ;;  %v577_v38 = vpack.c.bf16 %v964_v36, %v962_v34  ;;  %v966_v41 = vpop.eup %965 }
 0x21b   : > { %554 = vadd.xlane.f32.xlu1 %v553_v37  ;;  %v968_v42 = vpop.eup %967  ;;  %v549_v48 = vmul.f32 %v966_v41, %v547_v46 }
 0x21c   : > { %909 = vmatmul.mubr.msk.bf16.vlgmr.msra.gmra.mrb[0].mxu1 %vm515_vm3, %v577_v38  ;;  %v548_v44 = vmul.f32 %v968_v42, %v546_v43 }
 0x22c   : > { %572 = vperm.xlu1 %956, %v966_v41  }
 0x22d   : > { %567 = vperm.xlu0 %957, %v968_v42  }
 0x2a4   : > { %v552_v45 = vpop.xlane.xlu0 %551 }
 0x2a5   : > { %v556_v47 = vadd.f32 %v552_v45, %v548_v44 }
 0x2a7   : > { %559 = vst.msk [vmem:[#allocation3] sm:$0xff] %vm433_vm2, %v556_v47 }
 0x2a8   : > { %v555_v49 = vpop.xlane.xlu1 %554 }
 0x2a9   : > { %v557_v50 = vadd.f32 %v555_v49, %v549_v48 }
 0x2ab   : > { %560 = vst.msk [vmem:[#allocation3 + $0x8] sm:$0xff] %vm433_vm2, %v557_v50 }
 0x2ac   : > { %v568_v56 = vpop.permute.xlu0 %567  ;;  %v573_v58 = vpop.permute.xlu1 %572 }
 0x2ad   : > { %v575_v59 = vmul.f32 %v568_v56, %v563_v55  ;;  %v576_v61 = vmul.f32 %v573_v58, %v564_v57 }
 0x2ae   : > { %v637_v51 = vld [vmem:[#allocation3] sm:$0xff] }
 0x2af   : > { %969 = vrcp.f32 %v637_v51 }
 0x2b2   : > { %v638_v52 = vld [vmem:[#allocation3 + $0x8] sm:$0xff] }
 0x2b3   : > { %971 = vrcp.f32 %v638_v52 }
 0x2b9   : > { %v970_v53 = vpop.eup %969 }
 0x2ba   : > { %643 = vperm.xlu0 %957, %v970_v53  }
 0x2bd   : > { %v972_v54 = vpop.eup %971 }
 0x2be   : > { %648 = vperm.xlu0 %957, %v972_v54  }
 0x2ef   : > { %v621_v60 = vpop.f32.mrb[0].mxu1 }
 0x2f0   : > { %v628_v62 = vadd.f32 %v621_v60, %v575_v59  ;;  %v910_v63 = vpop.f32.mrb[1].mxu1 }
 0x2f1   : > { %v624_v0 = vpop.f32.mrb[2].mxu1 }
 0x2f2   : > { %630 = vst.msk [vmem:[#allocation4] sm:$0xff] %vm438_vm0, %v628_v62  ;;  %v629_v1 = vadd.f32 %v624_v0, %v576_v61  ;;  %v911_v2 = vpop.f32.mrb[3].mxu1 }
 0x2f4   : > { %631 = vst.msk [vmem:[#allocation4 + $0x8] sm:$0xff] %vm438_vm0, %v629_v1 }
 0x2f9   : > { %v635_v3 = vld [vmem:[#allocation4] sm:$0xff] }
 0x2fb   : > { %v636_v7 = vld [vmem:[#allocation4 + $0x8] sm:$0xff] }
 0x339   : > { %v644_v4 = vpop.permute.xlu0 %643 }
 0x33a   : > { %v651_v5 = vmul.f32 %v644_v4, %v635_v3 }
 0x33c   : > { %v890_v6 = vpack.c.bf16 %v651_v5, %v651_v5 }
 0x33d   : > { %v649_v8 = vpop.permute.xlu0 %648 }
 0x33e   : > { %662 = vst.msk [vmem:[%s426_s14] sm:$0xf] %vm661_vm4, %v890_v6  ;;  %v652_v9 = vmul.f32 %v649_v8, %v636_v7 }
 0x340   : > { %v891_v10 = vpack.c.bf16 %v652_v9, %v652_v9 }
 0x342   : > { %663 = vst.msk [vmem:[%s426_s14 + $0x4] sm:$0xf] %vm661_vm4, %v891_v10 }
 0x343 PF: > { %s14_s19 = sadd.s32 1, %s1011_s19   ;;  %s1132_s15 = smov %s1003_s17 }
 0x344   : > { %p11_p7 = scmp.ge.s32.totalorder %s14_s19, 10   ;;  %s1133_s16 = smov %s1007_s18 }
 0x345   : > { %s1134_s17 = smov %s1137_s20  ;;  %s1135_s18 = smov %s1141_s21 }
 0x346   :  { %13 = sbr.rel (!%p11_p7) target bundleno = 3 (0x3), region = 83 }

// kernel: encoder_decoder_forward.34
= control target key start
LH: loop header
LB: loop body
LE: loop exit
PB: predicated region body
PF: predicated region fallthrough
CT: control target
= control target key end

     0   :  { %s731_s15 = smov 0   ;;  %s733_s16 = smov 0   ;;  %s798_s0 = inlined_call_operand.vmem [shape: bf16[32,128], index: 0, kind: input, shape index: {}]   ;;  %s799_s1 = inlined_call_operand.vmem [shape: bf16[128,128], index: 1, kind: input, shape index: {}]   ;;  %s800_s2 = inlined_call_operand.vmem [shape: f32[1,128], index: 2, kind: input, shape index: {}]   ;;  %s801_s3 = inlined_call_operand.vmem [shape: f32[32,128], index: 3, kind: input, shape index: {}]   ;;  %s802_s4 = inlined_call_operand.vmem [shape: f32[32,128], index: 4, kind: output, shape index: {}]  }
   0x1   :  { %s735_s17 = smov 0  }
   0x2 LB: > { %s33_s18 = sadd.s32 1, %s698_s16  ;;  %p597_p0 = scmp.ge.s32.totalorder %s702_s17, 1  ;;  %s702_s17 = sphi %s735_s17, %s14_s17   ;;  %s698_s16 = sphi %s733_s16, %s804_s16   ;;  %s694_s15 = sphi %s731_s15, %s803_s15  }
   0x3   : > { %p35_p1 = scmp.ge.s32.totalorder %s33_s18, 2  ;;  %p229_p2 = scmp.lt.s32.totalorder %s702_s17, 3 }
   0x5   : > { %s806_s18 = smov (%p35_p1, %s33_s18), 0  ;;  %p230_p3 = pnand %p597_p0, %p229_p2 }
   0x6   : > { %v671_v0 = vld [vmem:[%s799_s1] sm:$0xff] (!%p230_p3)   ;;  %v704_v1 = vmov (!%p230_p3), 0.0   ;;  %v672_v2 = vld [vmem:[%s799_s1 + $0x8] sm:$0xff] (!%p230_p3)   ;;  %vm705_vm0 = vmmov (!%p230_p3), 0   ;;  %s598_s23 = sshll.u32 (!%p230_p3), %s694_s15, 1  ;;  %v673_v3 = vld [vmem:[%s799_s1 + $0x10] sm:$0xff] (!%p230_p3)  }
   0x7   : > { %233 = sbr.rel (%p230_p3) target bundleno = 258 (0x102), region = 36  ;;  %625 = vmatprep.subr.bf16.mxu0 (!%p230_p3), %v704_v1  ;;  %641 = vmatprep.mubr.msk.bf16.mxu0 (!%p230_p3), %vm705_vm0, %v704_v1  ;;  %p281_p4 = scmp.lt.s32.totalorder (!%p230_p3), %s598_s23, 3  ;;  %v674_v4 = vld [vmem:[%s799_s1 + $0x18] sm:$0xff] (!%p230_p3)   ;;  %v675_v5 = vld [vmem:[%s799_s1 + $0x20] sm:$0xff] (!%p230_p3)   ;;  %v676_v6 = vld [vmem:[%s799_s1 + $0x28] sm:$0xff] (!%p230_p3)  }
   0x8   : > { %626 = vmatpush3.bf16.msra.mxu0 (!%p230_p3), %v671_v0  ;;  %v677_v7 = vld [vmem:[%s799_s1 + $0x30] sm:$0xff] (!%p230_p3)   ;;  %v678_v8 = vld [vmem:[%s799_s1 + $0x38] sm:$0xff] (!%p230_p3)   ;;  %v613_v10 = vld [vmem:[%s800_s2] ss:$0 sm:$0xff] (!%p230_p3) }
   0x9   : > { %627 = vmatprep.subr.bf16.mxu0 (!%p230_p3), %v704_v1 }
   0xc   : > { %628 = vmatpush3.bf16.msra.mxu0 (!%p230_p3), %v672_v2 }
   0xd   : > { %629 = vmatprep.subr.bf16.mxu0 (!%p230_p3), %v704_v1 }
   0xe   : > { %s808_s23 = smov (!%p281_p4, %s598_s23), 3 }
   0xf   : > { %s599_s26 = sshll.u32 %s808_s23, 2  ;;  %s601_s14 = sshll.u32 %s808_s23, 3 }
  0x10   : > { %s287_s29 = scalar_lea.vmem %s798_s0, %s599_s26  ;;  %630 = vmatpush3.bf16.msra.mxu0 %v673_v3  ;;  %s308_s20 = scalar_lea.vmem %s801_s3, %s601_s14 }
  0x11   : > { %631 = vmatprep.subr.bf16.mxu0 %v704_v1  ;;  %v679_v9 = vld [vmem:[%s287_s29] sm:$0xff]   ;;  %s317_s26 = scalar_lea.vmem %s802_s4, %s601_s14  ;;  %v460_v16 = vld [vmem:[%s308_s20 + $0x8] sm:$0xff] }
  0x12   : > { %v459_v12 = vld [vmem:[%s308_s20] sm:$0xff] }
  0x14   : > { %632 = vmatpush3.bf16.msra.mxu0 %v674_v4 }
  0x15   : > { %633 = vmatprep.subr.bf16.mxu0 %v704_v1 }
  0x18   : > { %634 = vmatpush3.bf16.msra.mxu0 %v675_v5 }
  0x19   : > { %635 = vmatprep.subr.bf16.mxu0 %v704_v1 }
  0x1c   : > { %636 = vmatpush3.bf16.msra.mxu0 %v676_v6 }
  0x1d   : > { %637 = vmatprep.subr.bf16.mxu0 %v704_v1 }
  0x20   : > { %638 = vmatpush3.bf16.msra.mxu0 %v677_v7 }
  0x21   : > { %639 = vmatprep.subr.bf16.mxu0 %v704_v1 }
  0x24   : > { %640 = vmatpush3.bf16.msra.mxu0 %v678_v8 }
  0x27   : > { %642 = vmatmul.mubr.bf16.vlgmr.msra.gmra.mrb[0].mxu0 %v679_v9 }
  0xfa   : > { %v434_v11 = vpop.f32.mrb[0].mxu0 }
  0xfb   : > { %v457_v13 = vadd.f32 %v613_v10, %v434_v11  ;;  %v643_v14 = vpop.f32.mrb[1].mxu0 }
  0xfc   : > { %v437_v15 = vpop.f32.mrb[2].mxu0 }
  0xfd   : > { %v461_v17 = vadd.f32 %v459_v12, %v457_v13  ;;  %v458_v18 = vadd.f32 %v613_v10, %v437_v15  ;;  %v644_v19 = vpop.f32.mrb[3].mxu0 }
  0xff   : > { %463 = vst [vmem:[%s317_s26] sm:$0xff] %v461_v17  ;;  %v462_v20 = vadd.f32 %v460_v16, %v458_v18 }
 0x101   : > { %464 = vst [vmem:[%s317_s26 + $0x8] sm:$0xff] %v462_v20 }
 0x102 PF: > { %s14_s17 = sadd.s32 1, %s702_s17   ;;  %s803_s15 = smov %s698_s16 }
 0x103   : > { %p11_p5 = scmp.ge.s32.totalorder %s14_s17, 4   ;;  %s804_s16 = smov %s806_s18 }
 0x105   :  { %13 = sbr.rel (!%p11_p5) target bundleno = 2 (0x2), region = 83 }

// kernel: encoder_decoder_forward.32
= control target key start
LH: loop header
LB: loop body
LE: loop exit
PB: predicated region body
PF: predicated region fallthrough
CT: control target
= control target key end

     0   :  { %s888_s12 = smov 0   ;;  %s890_s13 = smov 0   ;;  %s1033_s0 = inlined_call_operand.vmem [shape: bf16[32,128], index: 0, kind: input, shape index: {}]   ;;  %s1034_s1 = inlined_call_operand.vmem [shape: bf16[128,384], index: 1, kind: input, shape index: {}]   ;;  %s1035_s2 = inlined_call_operand.vmem [shape: f32[1,384], index: 2, kind: input, shape index: {}]   ;;  %s1036_s3 = inlined_call_operand.vmem [shape: bf16[32,384], index: 3, kind: output, shape index: {}]  }
   0x1   :  { %s892_s14 = smov 0   ;;  %s894_s15 = smov 0  }
   0x2   :  { %s896_s16 = smov 0   ;;  %s898_s17 = smov 0  }
   0x3   :  { %s900_s18 = smov 0   ;;  %s902_s19 = smov 0  }
   0x4   :  { %s904_s20 = smov 0  }
   0x5 LB: > { %s645_s21 = sadd.s32 4294967295, %s864_s20   ;;  %s28_s22 = sadd.s32 1, %s856_s18  ;;  %s864_s20 = sphi %s904_s20, %s13_s20   ;;  %s860_s19 = sphi %s902_s19, %s1045_s19   ;;  %s856_s18 = sphi %s900_s18, %s1044_s18   ;;  %s852_s17 = sphi %s898_s17, %s1043_s17   ;;  %s848_s16 = sphi %s896_s16, %s1042_s16   ;;  %s844_s15 = sphi %s894_s15, %s1041_s15   ;;  %s840_s14 = sphi %s892_s14, %s1040_s14   ;;  %s836_s13 = sphi %s890_s13, %s1039_s13   ;;  %s832_s12 = sphi %s888_s12, %s1038_s12  }
   0x6   : > { %p30_p0 = scmp.ge.s32.totalorder %s28_s22, 3  ;;  %s32_s23 = sadd.s32 1, %s860_s19 }
   0x7   : > { %s69_s24 = sadd.s32 1, %s844_s15  ;;  %p76_p1 = scmp.ne.s32.totalorder %s844_s15, %s840_s14 }
   0x8   : > { %s1047_s22 = smov (%p30_p0, %s28_s22), 0  ;;  %s1049_s23 = smov (!%p30_p0, %s32_s23), %s860_s19 }
   0x9   : > { %s65_s25 = ssub.s32 %s856_s18, %s1047_s22  ;;  %p77_p2 = scmp.eq.s32.totalorder %s864_s20, 0 }
   0xa   : > { %p34_p3 = scmp.ge.s32.totalorder %s1049_s23, 2  ;;  %p67_p4 = scmp.eq.s32.totalorder %s65_s25, 0 }
   0xb   : > { %p78_p5 = por %p77_p2, %p76_p1  ;;  %s123_s26 = sadd.s32 1, %s836_s13 }
   0xc   : > { %s1051_s23 = smov (%p34_p3, %s1049_s23), 0  ;;  %p133_p6 = scmp.ne.s32.totalorder %s836_s13, %s832_s12 }
   0xd   : > { %s949_s27 = scalar_select %p67_p4, %s844_s15, %s69_s24  }
   0xe   : > { %s118_s28 = ssub.s32 %s860_s19, %s1051_s23  ;;  %p134_p7 = scmp.eq.s32.totalorder %s645_s21, 5 }
   0xf   : > { %s120_s29 = sor.u32 %s118_s28, %s65_s25  ;;  %p648_p10 = scmp.ge.s32.totalorder %s864_s20, 6 }
  0x10   : > { %p121_p8 = scmp.eq.s32.totalorder %s120_s29, 0  ;;  %p955_p9 = por %p134_p7, %p133_p6 }
  0x11   : > { %156 = sbr.rel (%p648_p10) target bundleno = 38 (0x26), region = 16 }
  0x12   : > { %s960_s4 = scalar_select %p121_p8, %s836_s13, %s123_s26  }
  0x18   : > { %171 = sbr.rel (!%p78_p5) target bundleno = 38 (0x26), region = 24  ;;  %s173_s5 = sand.u32 (%p78_p5), 1, %s844_s15  }
  0x19   : > { %s650_s6 = sshll.u32 (%p78_p5), %s856_s18, 2  ;;  %s649_s7 = sshll.u32 (%p78_p5), %s173_s5, 6 }
  0x1a   : > { %s968_s10 = scalar_lea.vmem (%p78_p5), %s1034_s1, %s650_s6  ;;  %s175_s11 = scalar_lea.vmem (%p78_p5), [#allocation3], %s649_s7 }
  0x1b   : > { %v196_v0 = vld [vmem:[%s968_s10] sm:$0xf] (%p78_p5)  ;;  %v198_v1 = vld [vmem:[%s968_s10 + $0xc] sm:$0xf] (%p78_p5)  ;;  %v200_v2 = vld [vmem:[%s968_s10 + $0x18] sm:$0xf] (%p78_p5) }
  0x1c   : > { %197 = vst [vmem:[%s175_s11] sm:$0xf] (%p78_p5), %v196_v0  ;;  %199 = vst [vmem:[%s175_s11 + $0x4] sm:$0xf] (%p78_p5), %v198_v1  ;;  %v202_v3 = vld [vmem:[%s968_s10 + $0x24] sm:$0xf] (%p78_p5) }
  0x1d   : > { %v204_v4 = vld [vmem:[%s968_s10 + $0x30] sm:$0xf] (%p78_p5)  ;;  %201 = vst [vmem:[%s175_s11 + $0x8] sm:$0xf] (%p78_p5), %v200_v2  ;;  %203 = vst [vmem:[%s175_s11 + $0xc] sm:$0xf] (%p78_p5), %v202_v3 }
  0x1e   : > { %205 = vst [vmem:[%s175_s11 + $0x10] sm:$0xf] (%p78_p5), %v204_v4  ;;  %v206_v5 = vld [vmem:[%s968_s10 + $0x3c] sm:$0xf] (%p78_p5)  ;;  %v208_v6 = vld [vmem:[%s968_s10 + $0x48] sm:$0xf] (%p78_p5) }
  0x1f   : > { %v210_v7 = vld [vmem:[%s968_s10 + $0x54] sm:$0xf]  ;;  %207 = vst [vmem:[%s175_s11 + $0x14] sm:$0xf] %v206_v5  ;;  %209 = vst [vmem:[%s175_s11 + $0x18] sm:$0xf] %v208_v6 }
  0x20   : > { %211 = vst [vmem:[%s175_s11 + $0x1c] sm:$0xf] %v210_v7  ;;  %v212_v8 = vld [vmem:[%s968_s10 + $0x60] sm:$0xf]  ;;  %v214_v9 = vld [vmem:[%s968_s10 + $0x6c] sm:$0xf] }
  0x21   : > { %v216_v10 = vld [vmem:[%s968_s10 + $0x78] sm:$0xf]  ;;  %213 = vst [vmem:[%s175_s11 + $0x20] sm:$0xf] %v212_v8  ;;  %215 = vst [vmem:[%s175_s11 + $0x24] sm:$0xf] %v214_v9 }
  0x22   : > { %217 = vst [vmem:[%s175_s11 + $0x28] sm:$0xf] %v216_v10  ;;  %v218_v11 = vld [vmem:[%s968_s10 + $0x84] sm:$0xf]  ;;  %v220_v12 = vld [vmem:[%s968_s10 + $0x90] sm:$0xf] }
  0x23   : > { %v222_v13 = vld [vmem:[%s968_s10 + $0x9c] sm:$0xf]  ;;  %219 = vst [vmem:[%s175_s11 + $0x2c] sm:$0xf] %v218_v11  ;;  %221 = vst [vmem:[%s175_s11 + $0x30] sm:$0xf] %v220_v12 }
  0x24   : > { %223 = vst [vmem:[%s175_s11 + $0x34] sm:$0xf] %v222_v13  ;;  %v224_v14 = vld [vmem:[%s968_s10 + $0xa8] sm:$0xf]  ;;  %v226_v15 = vld [vmem:[%s968_s10 + $0xb4] sm:$0xf] }
  0x25   : > { %225 = vst [vmem:[%s175_s11 + $0x38] sm:$0xf] %v224_v14  ;;  %227 = vst [vmem:[%s175_s11 + $0x3c] sm:$0xf] %v226_v15 }
  0x26 PF: > { %p651_p11 = scmp.ge.s32.totalorder %s864_s20, 1  ;;  %p287_p12 = scmp.lt.s32.totalorder %s864_s20, 7 }
  0x28   : > { %p288_p13 = pnand %p651_p11, %p287_p12 }
  0x29   : > { %s294_s21 = sand.u32 (!%p288_p13), 1, %s840_s14   ;;  %s654_s24 = sshll.u32 (!%p288_p13), %s852_s17, 1  ;;  %v866_v16 = vmov (!%p288_p13), 0.0   ;;  %vm867_vm0 = vmmov (!%p288_p13), 0  }
  0x2a   : > { %291 = sbr.rel (%p288_p13) target bundleno = 303 (0x12f), region = 69  ;;  %690 = vmatprep.subr.bf16.mxu0 (!%p288_p13), %v866_v16  ;;  %s652_s25 = sshll.u32 (!%p288_p13), %s294_s21, 6  ;;  %706 = vmatprep.mubr.msk.bf16.mxu0 (!%p288_p13), %vm867_vm0, %v866_v16 }
  0x2b   : > { %p328_p0 = scmp.lt.s32.totalorder (!%p288_p13), %s654_s24, 3  ;;  %s296_s26 = scalar_lea.vmem (!%p288_p13), [#allocation3], %s652_s25 }
  0x2c   : > { %v785_v17 = vld [vmem:[%s296_s26] sm:$0xff] (!%p288_p13)   ;;  %v786_v18 = vld [vmem:[%s296_s26 + $0x8] sm:$0xff] (!%p288_p13)   ;;  %v787_v19 = vld [vmem:[%s296_s26 + $0x10] sm:$0xff] (!%p288_p13)   ;;  %p337_p1 = scmp.lt.s32.totalorder (!%p288_p13), %s848_s16, 2  ;;  %s324_s10 = sand.u32 (!%p288_p13), 1, %s832_s12  }
  0x2d   : > { %691 = vmatpush3.bf16.msra.mxu0 (!%p288_p13), %v785_v17  ;;  %v788_v20 = vld [vmem:[%s296_s26 + $0x18] sm:$0xff] (!%p288_p13)   ;;  %v789_v21 = vld [vmem:[%s296_s26 + $0x20] sm:$0xff] (!%p288_p13)   ;;  %v790_v22 = vld [vmem:[%s296_s26 + $0x28] sm:$0xff] (!%p288_p13)   ;;  %s653_s11 = sshll.u32 (!%p288_p13), %s324_s10, 3 }
  0x2e   : > { %692 = vmatprep.subr.bf16.mxu0 (!%p288_p13), %v866_v16  ;;  %v791_v23 = vld [vmem:[%s296_s26 + $0x30] sm:$0xff] (!%p288_p13)   ;;  %v792_v24 = vld [vmem:[%s296_s26 + $0x38] sm:$0xff] (!%p288_p13)   ;;  %s326_s21 = scalar_lea.vmem (!%p288_p13), [#allocation4], %s653_s11 }
  0x31   : > { %s1053_s24 = smov (!%p328_p0, %s654_s24), 3  ;;  %693 = vmatpush3.bf16.msra.mxu0 %v786_v18 }
  0x32   : > { %s655_s28 = sshll.u32 %s1053_s24, 2  ;;  %694 = vmatprep.subr.bf16.mxu0 %v866_v16  ;;  %s710_s24 = smul.u32 (%p955_p9), 6, %s852_s17 }
  0x33   : > { %s334_s14 = scalar_lea.vmem %s1033_s0, %s655_s28 }
  0x34   : > { %v793_v25 = vld [vmem:[%s334_s14] sm:$0xff]   ;;  %s338_s6 = scalar_select %p337_p1, %s848_s16, 2 }
  0x35   : > { %695 = vmatpush3.bf16.msra.mxu0 %v787_v19  ;;  %s500_s25 = sadd.s32 (%p955_p9), %s848_s16, %s710_s24 }
  0x36   : > { %696 = vmatprep.subr.bf16.mxu0 %v866_v16  ;;  %s339_s9 = scalar_lea.vmem %s1035_s2, %s338_s6  ;;  %s671_s12 = sshll.u32 (%p955_p9), %s500_s25, 2 }
  0x37   : > { %v665_v27 = vld [vmem:[%s339_s9] ss:$0 sm:$0xff]  ;;  %s502_s29 = scalar_lea.vmem (%p955_p9), %s1036_s3, %s671_s12 }
  0x39   : > { %697 = vmatpush3.bf16.msra.mxu0 %v788_v20 }
  0x3a   : > { %698 = vmatprep.subr.bf16.mxu0 %v866_v16 }
  0x3d   : > { %699 = vmatpush3.bf16.msra.mxu0 %v789_v21 }
  0x3e   : > { %700 = vmatprep.subr.bf16.mxu0 %v866_v16 }
  0x41   : > { %701 = vmatpush3.bf16.msra.mxu0 %v790_v22 }
  0x42   : > { %702 = vmatprep.subr.bf16.mxu0 %v866_v16 }
  0x45   : > { %703 = vmatpush3.bf16.msra.mxu0 %v791_v23 }
  0x46   : > { %704 = vmatprep.subr.bf16.mxu0 %v866_v16 }
  0x49   : > { %705 = vmatpush3.bf16.msra.mxu0 %v792_v24 }
  0x4c   : > { %707 = vmatmul.mubr.bf16.vlgmr.msra.gmra.mrb[0].mxu0 %v793_v25 }
 0x11f   : > { %v456_v26 = vpop.f32.mrb[0].mxu0 }
 0x120   : > { %v708_v28 = vpop.f32.mrb[1].mxu0  ;;  %v479_v30 = vadd.f32 %v665_v27, %v456_v26  ;;  %497 = sbr.rel (!%p955_p9) target bundleno = 303 (0x12f), region = 85 }
 0x121   : > { %v459_v29 = vpop.f32.mrb[2].mxu0 }
 0x122   : > { %v480_v31 = vadd.f32 %v665_v27, %v459_v29  ;;  %v709_v32 = vpop.f32.mrb[3].mxu0 }
 0x124   : > { %v679_v33 = vpack.c.bf16 %v480_v31, %v479_v30 }
 0x126   : > { %680 = vst [vmem:[%s326_s21] sm:$0xff] %v679_v33  }
 0x12d   : > { %v518_v34 = vld [vmem:[%s326_s21] sm:$0xf]  ;;  %v520_v35 = vld [vmem:[%s326_s21 + $0x4] sm:$0xf] }
 0x12e   : > { %519 = vst [vmem:[%s502_s29] sm:$0xf] %v518_v34  ;;  %521 = vst [vmem:[%s502_s29 + $0xc] sm:$0xf] %v520_v35 }
 0x12f PF: > { %s13_s20 = sadd.s32 1, %s864_s20   ;;  %s1038_s12 = smov %s836_s13 }
 0x130   : > { %p10_p2 = scmp.ge.s32.totalorder %s13_s20, 8   ;;  %s1039_s13 = smov %s960_s4 }
 0x131   : > { %s1040_s14 = smov %s844_s15  ;;  %s1041_s15 = smov %s949_s27 }
 0x132   : > { %s1042_s16 = smov %s856_s18  ;;  %s1043_s17 = smov %s860_s19 }
 0x133   : > { %s1044_s18 = smov %s1047_s22  ;;  %s1045_s19 = smov %s1051_s23 }
 0x134   :  { %12 = sbr.rel (!%p10_p2) target bundleno = 5 (0x5), region = 163 }

// kernel: encoder_decoder_forward.31
= control target key start
LH: loop header
LB: loop body
LE: loop exit
PB: predicated region body
PF: predicated region fallthrough
CT: control target
= control target key end

     0   :  { %s345_s12 = smov 0   ;;  %s372_s0 = inlined_call_operand.vmem [shape: f32[32,128], index: 0, kind: input, shape index: {}]   ;;  %s373_s1 = inlined_call_operand.vmem [shape: f32[1,128], index: 1, kind: input, shape index: {}]   ;;  %s374_s2 = inlined_call_operand.vmem [shape: f32[1,128], index: 2, kind: input, shape index: {}]   ;;  %s375_s3 = inlined_call_operand.vmem [shape: bf16[32,128], index: 3, kind: output, shape index: {}]  }
   0x1 LB: > { %s283_s13 = sadd.s32 4294967295, %s323_s12   ;;  %p287_p0 = scmp.ge.s32.totalorder %s323_s12, 1  ;;  %s323_s12 = sphi %s345_s12, %s13_s12  }
   0x2   : > { %p138_p1 = scmp.lt.s32.totalorder %s323_s12, 3 }
   0x4   : > { %p139_p2 = pnand %p287_p0, %p138_p1 }
   0x5   : > { %s288_s14 = sshll.u32 (!%p139_p2), %s283_s13, 1  ;;  %v292_v18 = vld [vmem:[%s373_s1] ss:$0 sm:$0xff] (!%p139_p2) }
   0x6   : > { %142 = sbr.rel (%p139_p2) target bundleno = 335 (0x14f), region = 32  ;;  %p163_p3 = scmp.lt.s32.totalorder (!%p139_p2), %s288_s14, 3  ;;  %v293_v22 = vld [vmem:[%s374_s2] ss:$0 sm:$0xff] (!%p139_p2) }
   0xd   : > { %s377_s14 = smov (!%p163_p3, %s288_s14), 3 }
   0xe   : > { %s289_s15 = sshll.u32 %s377_s14, 3  ;;  %s291_s23 = sshll.u32 %s377_s14, 2 }
   0xf   : > { %s166_s18 = scalar_lea.vmem %s372_s0, %s289_s15  ;;  %s172_s26 = scalar_lea.vmem %s375_s3, %s291_s23 }
  0x10   : > { %v174_v0 = vld [vmem:[%s166_s18] sm:$0xff]  ;;  %v175_v1 = vld [vmem:[%s166_s18 + $0x8] sm:$0xff] }
  0x11   : > { %176 = vadd.xlane.f32.xlu0 %v174_v0 }
  0x15   : > { %178 = vadd.xlane.f32.xlu0 %v175_v1 }
  0x9e   : > { %v177_v2 = vpop.xlane.xlu0 %176 }
  0x9f   : > { %v181_v3 = vmul.f32 0.0078125, %v177_v2 }
  0xa1   : > { %v183_v4 = vsub.f32 %v174_v0, %v181_v3 }
  0xa2   : > { %v179_v5 = vpop.xlane.xlu0 %178 }
  0xa3   : > { %v182_v6 = vmul.f32 0.0078125, %v179_v5  ;;  %v185_v7 = vmul.f32 %v183_v4, %v183_v4 }
  0xa5   : > { %v184_v8 = vsub.f32 %v175_v1, %v182_v6  ;;  %187 = vadd.xlane.f32.xlu1 %v185_v7 }
  0xa7   : > { %v186_v9 = vmul.f32 %v184_v8, %v184_v8 }
  0xa9   : > { %189 = vadd.xlane.f32.xlu1 %v186_v9 }
 0x132   : > { %v188_v10 = vpop.xlane.xlu1 %187 }
 0x133   : > { %v191_v11 = vmul.f32 0.0078125, %v188_v10 }
 0x135   : > { %v193_v12 = vadd.f32 1e-05, %v191_v11 }
 0x136   : > { %v190_v13 = vpop.xlane.xlu1 %189 }
 0x137   : > { %313 = vrsqrt.f32 %v193_v12  ;;  %v192_v14 = vmul.f32 0.0078125, %v190_v13 }
 0x139   : > { %v194_v15 = vadd.f32 1e-05, %v192_v14 }
 0x13b   : > { %315 = vrsqrt.f32 %v194_v15 }
 0x141   : > { %v314_v16 = vpop.eup %313 }
 0x142   : > { %v197_v17 = vmul.f32 %v314_v16, %v183_v4 }
 0x144   : > { %v206_v20 = vmul.f32 %v292_v18, %v197_v17 }
 0x145   : > { %v316_v19 = vpop.eup %315 }
 0x146   : > { %v198_v21 = vmul.f32 %v316_v19, %v184_v8  ;;  %v215_v24 = vadd.f32 %v293_v22, %v206_v20 }
 0x148   : > { %v207_v23 = vmul.f32 %v292_v18, %v198_v21 }
 0x14a   : > { %v216_v25 = vadd.f32 %v293_v22, %v207_v23 }
 0x14c   : > { %v303_v26 = vpack.c.bf16 %v216_v25, %v215_v24 }
 0x14e   : > { %304 = vst [vmem:[%s172_s26] sm:$0xff] %v303_v26  }
 0x14f PF: > { %s13_s12 = sadd.s32 1, %s323_s12  }
 0x150   : > { %p10_p4 = scmp.ge.s32.totalorder %s13_s12, 4  }
 0x152   :  { %12 = sbr.rel (!%p10_p4) target bundleno = 1 (0x1), region = 62 }

// kernel: encoder_decoder_forward.60
= control target key start
LH: loop header
LB: loop body
LE: loop exit
PB: predicated region body
PF: predicated region fallthrough
CT: control target
= control target key end

     0   :  { %s328_s12 = smov 0   ;;  %s358_s0 = inlined_call_operand.vmem [shape: f32[32,128], index: 0, kind: input, shape index: {}]   ;;  %s359_s1 = inlined_call_operand.vmem [shape: f32[1,128], index: 1, kind: input, shape index: {}]   ;;  %s360_s2 = inlined_call_operand.vmem [shape: f32[1,128], index: 2, kind: input, shape index: {}]   ;;  %s361_s3 = inlined_call_operand.vmem [shape: f32[32,128], index: 3, kind: output, shape index: {}]  }
   0x1 LB: > { %s275_s13 = sadd.s32 4294967295, %s306_s12   ;;  %p279_p0 = scmp.ge.s32.totalorder %s306_s12, 1  ;;  %s306_s12 = sphi %s328_s12, %s13_s12  }
   0x2   : > { %p138_p1 = scmp.lt.s32.totalorder %s306_s12, 3 }
   0x4   : > { %p139_p2 = pnand %p279_p0, %p138_p1 }
   0x5   : > { %s280_s14 = sshll.u32 (!%p139_p2), %s275_s13, 1  ;;  %v284_v17 = vld [vmem:[%s359_s1] ss:$0 sm:$0xff] (!%p139_p2) }
   0x6   : > { %142 = sbr.rel (%p139_p2) target bundleno = 333 (0x14d), region = 32  ;;  %p163_p3 = scmp.lt.s32.totalorder (!%p139_p2), %s280_s14, 3  ;;  %v285_v19 = vld [vmem:[%s360_s2] ss:$0 sm:$0xff] (!%p139_p2) }
   0xd   : > { %s363_s14 = smov (!%p163_p3, %s280_s14), 3 }
   0xe   : > { %s281_s15 = sshll.u32 %s363_s14, 3 }
   0xf   : > { %s166_s18 = scalar_lea.vmem %s358_s0, %s281_s15  ;;  %s172_s25 = scalar_lea.vmem %s361_s3, %s281_s15 }
  0x10   : > { %v174_v0 = vld [vmem:[%s166_s18] sm:$0xff]  ;;  %v175_v1 = vld [vmem:[%s166_s18 + $0x8] sm:$0xff] }
  0x11   : > { %176 = vadd.xlane.f32.xlu0 %v174_v0 }
  0x15   : > { %178 = vadd.xlane.f32.xlu0 %v175_v1 }
  0x9e   : > { %v177_v2 = vpop.xlane.xlu0 %176 }
  0x9f   : > { %v181_v3 = vmul.f32 0.0078125, %v177_v2 }
  0xa1   : > { %v183_v4 = vsub.f32 %v174_v0, %v181_v3 }
  0xa2   : > { %v179_v5 = vpop.xlane.xlu0 %178 }
  0xa3   : > { %v182_v6 = vmul.f32 0.0078125, %v179_v5  ;;  %v185_v7 = vmul.f32 %v183_v4, %v183_v4 }
  0xa5   : > { %v184_v8 = vsub.f32 %v175_v1, %v182_v6  ;;  %187 = vadd.xlane.f32.xlu1 %v185_v7 }
  0xa7   : > { %v186_v9 = vmul.f32 %v184_v8, %v184_v8 }
  0xa9   : > { %189 = vadd.xlane.f32.xlu1 %v186_v9 }
 0x132   : > { %v188_v10 = vpop.xlane.xlu1 %187 }
 0x133   : > { %v191_v11 = vmul.f32 0.0078125, %v188_v10 }
 0x135   : > { %v193_v12 = vadd.f32 1e-05, %v191_v11 }
 0x136   : > { %v190_v13 = vpop.xlane.xlu1 %189 }
 0x137   : > { %296 = vrsqrt.f32 %v193_v12  ;;  %v192_v14 = vmul.f32 0.0078125, %v190_v13 }
 0x139   : > { %v194_v15 = vadd.f32 1e-05, %v192_v14 }
 0x13b   : > { %298 = vrsqrt.f32 %v194_v15 }
 0x141   : > { %v297_v16 = vpop.eup %296 }
 0x142   : > { %v197_v18 = vmul.f32 %v297_v16, %v183_v4 }
 0x144   : > { %v206_v20 = vmul.f32 %v284_v17, %v197_v18 }
 0x145   : > { %v299_v21 = vpop.eup %298 }
 0x146   : > { %v215_v22 = vadd.f32 %v285_v19, %v206_v20  ;;  %v198_v23 = vmul.f32 %v299_v21, %v184_v8 }
 0x148   : > { %217 = vst [vmem:[%s172_s25] sm:$0xff] %v215_v22  ;;  %v207_v24 = vmul.f32 %v284_v17, %v198_v23 }
 0x14a   : > { %v216_v25 = vadd.f32 %v285_v19, %v207_v24 }
 0x14c   : > { %218 = vst [vmem:[%s172_s25 + $0x8] sm:$0xff] %v216_v25 }
 0x14d PF: > { %s13_s12 = sadd.s32 1, %s306_s12  }
 0x14e   : > { %p10_p4 = scmp.ge.s32.totalorder %s13_s12, 4  }
 0x150   :  { %12 = sbr.rel (!%p10_p4) target bundleno = 1 (0x1), region = 62 }

// kernel: encoder_decoder_forward.45
= control target key start
LH: loop header
LB: loop body
LE: loop exit
PB: predicated region body
PF: predicated region fallthrough
CT: control target
= control target key end

     0   :  { %8 = vsyncpa [#allocation3], 0  ;;  %s548_s0 = inlined_call_operand.vmem [shape: f32[32,128], index: 0, kind: input, shape index: {}]   ;;  %s549_s1 = inlined_call_operand.vmem [shape: f32[1,128], index: 1, kind: input, shape index: {}]   ;;  %s550_s2 = inlined_call_operand.vmem [shape: f32[1,128], index: 2, kind: input, shape index: {}]   ;;  %s551_s3 = inlined_call_operand.hbm [shape: f32[32,128], index: 3, kind: output, shape index: {}]  }
   0x1   :  { %10 = vsyncpa [#allocation3 + $0x1], 0  ;;  %s440_s12 = smov 0   ;;  %s442_s13 = smov 0  }
   0x2   :  { %s444_s14 = smov 0   ;;  %s446_s15 = smov 0  }
   0x3 LB: > { %s461_s16 = sadd.s32 4294967295, %s415_s15   ;;  %s293_s17 = sadd.s32 4294967294, %s415_s15   ;;  %s415_s15 = sphi %s446_s15, %s557_s15   ;;  %s411_s14 = sphi %s444_s14, %s556_s14   ;;  %s407_s13 = sphi %s442_s13, %s555_s13   ;;  %s403_s12 = sphi %s440_s12, %s554_s12  }
   0x4   : > { %s465_s18 = sadd.s32 1, %s415_s15   ;;  %s91_s19 = sadd.s32 1, %s411_s14 }
   0x5   : > { %s88_s20 = ssub.s32 %s415_s15, %s465_s18  ;;  %p101_p0 = scmp.ne.s32.totalorder %s411_s14, %s407_s13 }
   0x6   : > { %p89_p1 = scmp.eq.s32.totalorder %s88_s20, 0  ;;  %p102_p2 = scmp.eq.s32.totalorder %s461_s16, 1 }
   0x7   : > { %p107_p3 = scmp.ne.s32.totalorder %s407_s13, %s403_s12  ;;  %p108_p4 = scmp.eq.s32.totalorder %s293_s17, 1 }
   0x8   : > { %s476_s21 = scalar_select %p89_p1, %s411_s14, %s91_s19  }
   0x9   : > { %p478_p5 = por %p102_p2, %p101_p0  ;;  %p482_p6 = por %p108_p4, %p107_p3 }
   0xa   : > { %p296_p7 = scmp.ge.s32.totalorder %s415_s15, 1  ;;  %p141_p8 = scmp.lt.s32.totalorder %s415_s15, 3 }
   0xc   : > { %p142_p9 = pnand %p296_p7, %p141_p8 }
   0xd   : > { %s298_s24 = sshll.u32 (!%p142_p9), %s461_s16, 1  ;;  %s162_s29 = sand.u32 (!%p142_p9), 1, %s407_s13   ;;  %v300_v17 = vld [vmem:[%s549_s1] ss:$0 sm:$0xff] (!%p142_p9) }
   0xe   : > { %145 = sbr.rel (%p142_p9) target bundleno = 355 (0x163), region = 32  ;;  %p166_p10 = scmp.lt.s32.totalorder (!%p142_p9), %s298_s24, 3  ;;  %v301_v19 = vld [vmem:[%s550_s2] ss:$0 sm:$0xff] (!%p142_p9) }
   0xf   : > { %s297_s5 = sshll.u32 (!%p142_p9), %s162_s29, 4  ;;  %s307_s8 = sshll.u32 (!%p142_p9), %s461_s16, 8 }
  0x10   : > { %s164_s9 = scalar_lea.vmem (!%p142_p9), [#allocation2], %s297_s5  ;;  %s503_s19 = scalar_lea.hbm (!%p142_p9), %s551_s3, %s307_s8 }
  0x11   : > { %s231_s10 = sshll.u32 (!%p142_p9), %s164_s9, 4  ;;  %s507_s20 = scalar_lea.sflag (!%p142_p9), [#allocation3], %s162_s29  ;;  %s505_s10 = int_to_ptr.vmem [resolvable:$true] %s231_s10 }
  0x12   : > { %s417_s16 = smov (!%p142_p9), [#allocation2]  }
  0x15   : > { %s559_s24 = smov (!%p166_p10, %s298_s24), 3 }
  0x16   : > { %s299_s25 = sshll.u32 %s559_s24, 3  ;;  %s353_s24 = scalar_lea.vmem %s505_s10, 256 }
  0x17   : > { %s169_s28 = scalar_lea.vmem %s548_s0, %s299_s25  ;;  %p354_p11 = scmp.ne.s32.totalorder %s505_s10, %s353_s24 }
  0x18   : > { %v172_v0 = vld [vmem:[%s169_s28] sm:$0xff]  ;;  %v173_v1 = vld [vmem:[%s169_s28 + $0x8] sm:$0xff]  ;;  %s357_s25 = sshll.u32 %s417_s16, 4  ;;  %s358_s25 = int_to_ptr.vmem [resolvable:$false] %s357_s25 }
  0x19   : > { %174 = vadd.xlane.f32.xlu0 %v172_v0  ;;  %p355_p12 = pnand %p354_p11, %p478_p5  ;;  %s359_s26 = scalar_lea.vmem %s358_s25, 512 }
  0x1a   : > { %p360_p0 = scmp.lt.s32.totalorder %s505_s10, %s358_s25  ;;  %p361_p1 = scmp.lt.s32.totalorder %s359_s26, %s353_s24 }
  0x1b   : > { %p356_p13 = pneg %p355_p12 }
  0x1c   : > { %p362_p2 = por %p361_p1, %p360_p0 }
  0x1d   : > { %176 = vadd.xlane.f32.xlu0 %v173_v1 }
  0x1e   : > { %p363_p3 = pnand %p362_p2, %p356_p13 }
  0xa6   : > { %v175_v2 = vpop.xlane.xlu0 %174 }
  0xa7   : > { %v179_v3 = vmul.f32 0.0078125, %v175_v2 }
  0xa9   : > { %v181_v4 = vsub.f32 %v172_v0, %v179_v3 }
  0xaa   : > { %v177_v5 = vpop.xlane.xlu0 %176 }
  0xab   : > { %v180_v6 = vmul.f32 0.0078125, %v177_v5  ;;  %v183_v7 = vmul.f32 %v181_v4, %v181_v4 }
  0xad   : > { %v182_v8 = vsub.f32 %v173_v1, %v180_v6  ;;  %185 = vadd.xlane.f32.xlu1 %v183_v7 }
  0xaf   : > { %v184_v9 = vmul.f32 %v182_v8, %v182_v8 }
  0xb1   : > { %187 = vadd.xlane.f32.xlu1 %v184_v9 }
 0x13a   : > { %v186_v10 = vpop.xlane.xlu1 %185 }
 0x13b   : > { %v189_v11 = vmul.f32 0.0078125, %v186_v10 }
 0x13d   : > { %v191_v12 = vadd.f32 1e-05, %v189_v11 }
 0x13e   : > { %v188_v13 = vpop.xlane.xlu1 %187 }
 0x13f   : > { %349 = vrsqrt.f32 %v191_v12  ;;  %v190_v14 = vmul.f32 0.0078125, %v188_v13 }
 0x141   : > { %v192_v15 = vadd.f32 1e-05, %v190_v14 }
 0x143   : > { %351 = vrsqrt.f32 %v192_v15 }
 0x149   : > { %v350_v16 = vpop.eup %349 }
 0x14a   : > { %v195_v18 = vmul.f32 %v350_v16, %v181_v4 }
 0x14c   : > { %v204_v20 = vmul.f32 %v300_v17, %v195_v18 }
 0x14d   : > { %v352_v21 = vpop.eup %351 }
 0x14e   : > { %v196_v22 = vmul.f32 %v352_v21, %v182_v8  ;;  %v213_v23 = vadd.f32 %v301_v19, %v204_v20 }
 0x150   : > { %v205_v24 = vmul.f32 %v300_v17, %v196_v22  ;;  %215 = vst [vmem:[%s164_s9] sm:$0xff] %v213_v23 }
 0x152   : > { %v214_v25 = vadd.f32 %v301_v19, %v205_v24 }
 0x154   : > { %216 = vst [vmem:[%s164_s9 + $0x8] sm:$0xff] %v214_v25 }
 0x155   : > { %366 = shalt.err (!%p363_p3)
}
 0x156   : > { %s367_s27 = scalar_lea.hbm %s503_s19, 256  ;;  %s371_s30 = scalar_lea.hbm %s551_s3, 512 }
 0x157   : > { %p368_p4 = scmp.ne.s32.totalorder %s503_s19, %s367_s27  ;;  %p372_p9 = scmp.lt.u32.totalorder %s503_s19, %s551_s3 }
 0x158   : > { %p373_p10 = scmp.lt.u32.totalorder %s371_s30, %s367_s27  ;;  %p375_p12 = scmp.lt.u32.totalorder %s367_s27, %s503_s19 }
 0x159   : > { %p369_p7 = pnand %p368_p4, %p478_p5 }
 0x15a   : > { %p374_p11 = por %p373_p10, %p372_p9 }
 0x15b   : > { %p370_p8 = pneg %p369_p7 }
 0x15c   : > { %p376_p13 = por %p375_p12, %p374_p11 }
 0x15e   : > { %p377_p0 = pnand %p376_p13, %p370_p8 }
 0x160   : > { %380 = shalt.err (!%p377_p0)
}
 0x161   : > { %s418_s6 = smov 128   ;;  %s419_s7 = smov 8  }
 0x162   : > { %308 = dma.vmem_to_hbm [thread:$0]  (%p478_p5), %s505_s10, 256, %s503_s19, %s507_s20, %s418_s6, %s418_s6, %s419_s7  }
 0x163 PF: > { %p314_p1 = scmp.ge.s32.totalorder %s415_s15, 2  ;;  %s246_s8 = sand.u32 1, %s403_s12  }
 0x164   : > { %s247_s9 = scalar_lea.sflag [#allocation3], %s246_s8 }
 0x165   : > { %p311_p2 = pnand %p314_p1, %p482_p6 }
 0x167   : > { %398 = dma.done.wait (!%p311_p2), %s247_s9, 256  }
 0x168   : > { %400 = vsyncadd (!%p311_p2), %s247_s9, 4294967040  ;;  %p13_p3 = scmp.ge.s32.totalorder %s465_s18, 4   ;;  %s554_s12 = smov %s407_s13 }
 0x169   : > { %s555_s13 = smov %s411_s14  ;;  %s556_s14 = smov %s476_s21 }
 0x16a   : > { %s557_s15 = smov %s465_s18  ;;  %15 = sbr.rel (!%p13_p3) target bundleno = 3 (0x3), region = 67 }
 0x171   :  { %252 = vsyncpa [#allocation3], 1 }
 0x172   :  { %254 = vsyncpa [#allocation3 + $0x1], 1 }

// kernel: encoder_decoder_forward.36
= control target key start
LH: loop header
LB: loop body
LE: loop exit
PB: predicated region body
PF: predicated region fallthrough
CT: control target
= control target key end

     0   :  { %s975_s12 = smov 0   ;;  %s977_s13 = smov 0   ;;  %s1141_s0 = inlined_call_operand.vmem [shape: bf16[32,128], index: 0, kind: input, shape index: {}]   ;;  %s1142_s1 = inlined_call_operand.vmem [shape: bf16[128,512], index: 1, kind: input, shape index: {}]   ;;  %s1143_s2 = inlined_call_operand.vmem [shape: f32[1,512], index: 2, kind: input, shape index: {}]   ;;  %s1144_s3 = inlined_call_operand.vmem [shape: bf16[32,512], index: 3, kind: output, shape index: {}]  }
   0x1   :  { %s979_s14 = smov 0   ;;  %s981_s15 = smov 0  }
   0x2   :  { %s983_s16 = smov 0   ;;  %s985_s17 = smov 0  }
   0x3   :  { %s987_s18 = smov 0   ;;  %s989_s19 = smov 0  }
   0x4   :  { %s991_s20 = smov 0  }
   0x5 LB: > { %s733_s21 = sadd.s32 4294967295, %s952_s20   ;;  %s28_s22 = sadd.s32 1, %s944_s18  ;;  %s952_s20 = sphi %s991_s20, %s13_s20   ;;  %s948_s19 = sphi %s989_s19, %s1153_s19   ;;  %s944_s18 = sphi %s987_s18, %s1152_s18   ;;  %s940_s17 = sphi %s985_s17, %s1151_s17   ;;  %s936_s16 = sphi %s983_s16, %s1150_s16   ;;  %s932_s15 = sphi %s981_s15, %s1149_s15   ;;  %s928_s14 = sphi %s979_s14, %s1148_s14   ;;  %s924_s13 = sphi %s977_s13, %s1147_s13   ;;  %s920_s12 = sphi %s975_s12, %s1146_s12  }
   0x6   : > { %p30_p0 = scmp.ge.s32.totalorder %s28_s22, 2  ;;  %s32_s23 = sadd.s32 1, %s948_s19 }
   0x7   : > { %s69_s24 = sadd.s32 1, %s932_s15  ;;  %p76_p1 = scmp.ne.s32.totalorder %s932_s15, %s928_s14 }
   0x8   : > { %s1155_s22 = smov (%p30_p0, %s28_s22), 0  ;;  %s1157_s23 = smov (!%p30_p0, %s32_s23), %s948_s19 }
   0x9   : > { %s65_s25 = ssub.s32 %s944_s18, %s1155_s22  ;;  %p77_p2 = scmp.eq.s32.totalorder %s952_s20, 0 }
   0xa   : > { %p34_p3 = scmp.ge.s32.totalorder %s1157_s23, 2  ;;  %p67_p4 = scmp.eq.s32.totalorder %s65_s25, 0 }
   0xb   : > { %p78_p5 = por %p77_p2, %p76_p1  ;;  %s123_s26 = sadd.s32 1, %s924_s13 }
   0xc   : > { %s1159_s23 = smov (%p34_p3, %s1157_s23), 0  ;;  %p133_p6 = scmp.ne.s32.totalorder %s924_s13, %s920_s12 }
   0xd   : > { %s1036_s27 = scalar_select %p67_p4, %s932_s15, %s69_s24  }
   0xe   : > { %s118_s28 = ssub.s32 %s948_s19, %s1159_s23  ;;  %p134_p7 = scmp.eq.s32.totalorder %s733_s21, 3 }
   0xf   : > { %s120_s29 = sor.u32 %s118_s28, %s65_s25  ;;  %p736_p10 = scmp.ge.s32.totalorder %s952_s20, 4 }
  0x10   : > { %p121_p8 = scmp.eq.s32.totalorder %s120_s29, 0  ;;  %p1042_p9 = por %p134_p7, %p133_p6 }
  0x11   : > { %156 = sbr.rel (%p736_p10) target bundleno = 36 (0x24), region = 16 }
  0x12   : > { %s1047_s4 = scalar_select %p121_p8, %s924_s13, %s123_s26  }
  0x18   : > { %171 = sbr.rel (!%p78_p5) target bundleno = 36 (0x24), region = 24  ;;  %s173_s5 = sand.u32 (%p78_p5), 1, %s932_s15  }
  0x19   : > { %s772_s6 = sshll.u32 (%p78_p5), %s944_s18, 3  ;;  %s737_s7 = sshll.u32 (%p78_p5), %s173_s5, 7 }
  0x1a   : > { %s1055_s10 = scalar_lea.vmem (%p78_p5), %s1142_s1, %s772_s6  ;;  %s175_s11 = scalar_lea.vmem (%p78_p5), [#allocation3], %s737_s7 }
  0x1b   : > { %v239_v0 = vld [vmem:[%s1055_s10] sm:$0xff] (%p78_p5)  ;;  %v241_v1 = vld [vmem:[%s1055_s10 + $0x10] sm:$0xff] (%p78_p5) }
  0x1c   : > { %v243_v2 = vld [vmem:[%s1055_s10 + $0x20] sm:$0xff] (%p78_p5)  ;;  %240 = vst [vmem:[%s175_s11] sm:$0xff] (%p78_p5), %v239_v0  ;;  %242 = vst [vmem:[%s175_s11 + $0x8] sm:$0xff] (%p78_p5), %v241_v1  ;;  %v245_v3 = vld [vmem:[%s1055_s10 + $0x30] sm:$0xff] (%p78_p5) }
  0x1d   : > { %244 = vst [vmem:[%s175_s11 + $0x10] sm:$0xff] (%p78_p5), %v243_v2  ;;  %v247_v4 = vld [vmem:[%s1055_s10 + $0x40] sm:$0xff] (%p78_p5)  ;;  %v249_v5 = vld [vmem:[%s1055_s10 + $0x50] sm:$0xff] (%p78_p5)  ;;  %246 = vst [vmem:[%s175_s11 + $0x18] sm:$0xff] (%p78_p5), %v245_v3 }
  0x1e   : > { %248 = vst [vmem:[%s175_s11 + $0x20] sm:$0xff] (%p78_p5), %v247_v4  ;;  %250 = vst [vmem:[%s175_s11 + $0x28] sm:$0xff] (%p78_p5), %v249_v5  ;;  %v251_v6 = vld [vmem:[%s1055_s10 + $0x60] sm:$0xff] (%p78_p5)  ;;  %v253_v7 = vld [vmem:[%s1055_s10 + $0x70] sm:$0xff] (%p78_p5) }
  0x1f   : > { %v255_v8 = vld [vmem:[%s1055_s10 + $0x80] sm:$0xff]  ;;  %252 = vst [vmem:[%s175_s11 + $0x30] sm:$0xff] %v251_v6  ;;  %254 = vst [vmem:[%s175_s11 + $0x38] sm:$0xff] %v253_v7  ;;  %v257_v9 = vld [vmem:[%s1055_s10 + $0x90] sm:$0xff] }
  0x20   : > { %256 = vst [vmem:[%s175_s11 + $0x40] sm:$0xff] %v255_v8  ;;  %v259_v10 = vld [vmem:[%s1055_s10 + $0xa0] sm:$0xff]  ;;  %v261_v11 = vld [vmem:[%s1055_s10 + $0xb0] sm:$0xff]  ;;  %258 = vst [vmem:[%s175_s11 + $0x48] sm:$0xff] %v257_v9 }
  0x21   : > { %260 = vst [vmem:[%s175_s11 + $0x50] sm:$0xff] %v259_v10  ;;  %262 = vst [vmem:[%s175_s11 + $0x58] sm:$0xff] %v261_v11  ;;  %v263_v12 = vld [vmem:[%s1055_s10 + $0xc0] sm:$0xff]  ;;  %v265_v13 = vld [vmem:[%s1055_s10 + $0xd0] sm:$0xff] }
  0x22   : > { %v267_v14 = vld [vmem:[%s1055_s10 + $0xe0] sm:$0xff]  ;;  %264 = vst [vmem:[%s175_s11 + $0x60] sm:$0xff] %v263_v12  ;;  %266 = vst [vmem:[%s175_s11 + $0x68] sm:$0xff] %v265_v13  ;;  %v269_v15 = vld [vmem:[%s1055_s10 + $0xf0] sm:$0xff] }
  0x23   : > { %268 = vst [vmem:[%s175_s11 + $0x70] sm:$0xff] %v267_v14  ;;  %270 = vst [vmem:[%s175_s11 + $0x78] sm:$0xff] %v269_v15 }
  0x24 PF: > { %p740_p11 = scmp.ge.s32.totalorder %s952_s20, 1  ;;  %p283_p12 = scmp.lt.s32.totalorder %s952_s20, 5 }
  0x26   : > { %p284_p13 = pnand %p740_p11, %p283_p12 }
  0x27   : > { %s290_s21 = sand.u32 (!%p284_p13), 1, %s928_s14   ;;  %s743_s24 = sshll.u32 (!%p284_p13), %s940_s17, 1  ;;  %v954_v16 = vmov (!%p284_p13), 0   ;;  %v519_v34 = vlaneseq (!%p284_p13) }
  0x28   : > { %287 = sbr.rel (%p284_p13) target bundleno = 328 (0x148), region = 66  ;;  %s741_s25 = sshll.u32 (!%p284_p13), %s290_s21, 7  ;;  %491 = vmatprep.mubr.bf16.mxu0 (!%p284_p13), %v954_v16 }
  0x29   : > { %p325_p0 = scmp.lt.s32.totalorder (!%p284_p13), %s743_s24, 3  ;;  %s1077_s26 = scalar_lea.vmem (!%p284_p13), [#allocation3], %s741_s25  ;;  %v520_v35 = vshrl.u32 (!%p284_p13), %v519_v34, 7 }
  0x2a   : > { %v849_v17 = vld [vmem:[%s1077_s26 + $0x4] ss:$8 sps:$4 sm:$0xff] (!%p284_p13)   ;;  %v851_v18 = vld [vmem:[%s1077_s26] ss:$8 sps:$4 sm:$0xff] (!%p284_p13)   ;;  %v852_v19 = vld [vmem:[%s1077_s26 + $0x14] ss:$8 sps:$4 sm:$0xff] (!%p284_p13)  }
  0x2b   : > { %459 = vmatprep.subr.bf16.mxu0 (!%p284_p13), %v849_v17  ;;  %v854_v20 = vld [vmem:[%s1077_s26 + $0x10] ss:$8 sps:$4 sm:$0xff] (!%p284_p13)   ;;  %v855_v21 = vld [vmem:[%s1077_s26 + $0x24] ss:$8 sps:$4 sm:$0xff] (!%p284_p13)   ;;  %v857_v22 = vld [vmem:[%s1077_s26 + $0x20] ss:$8 sps:$4 sm:$0xff] (!%p284_p13)  }
  0x2c   : > { %460 = vmatpush1.bf16.msra.mxu0 (!%p284_p13), %v851_v18  ;;  %v858_v23 = vld [vmem:[%s1077_s26 + $0x34] ss:$8 sps:$4 sm:$0xff] (!%p284_p13)   ;;  %v860_v24 = vld [vmem:[%s1077_s26 + $0x30] ss:$8 sps:$4 sm:$0xff] (!%p284_p13)   ;;  %v861_v25 = vld [vmem:[%s1077_s26 + $0x44] ss:$8 sps:$4 sm:$0xff] (!%p284_p13)  }
  0x2d   : > { %461 = vmatprep.subr.bf16.mxu0 (!%p284_p13), %v852_v19  ;;  %v863_v26 = vld [vmem:[%s1077_s26 + $0x40] ss:$8 sps:$4 sm:$0xff] (!%p284_p13)   ;;  %v864_v27 = vld [vmem:[%s1077_s26 + $0x54] ss:$8 sps:$4 sm:$0xff] (!%p284_p13)   ;;  %v866_v28 = vld [vmem:[%s1077_s26 + $0x50] ss:$8 sps:$4 sm:$0xff] (!%p284_p13)  }
  0x2e   : > { %v867_v29 = vld [vmem:[%s1077_s26 + $0x64] ss:$8 sps:$4 sm:$0xff] (!%p284_p13)   ;;  %v869_v30 = vld [vmem:[%s1077_s26 + $0x60] ss:$8 sps:$4 sm:$0xff] (!%p284_p13)   ;;  %v870_v31 = vld [vmem:[%s1077_s26 + $0x74] ss:$8 sps:$4 sm:$0xff] (!%p284_p13)  }
  0x2f   : > { %s1161_s24 = smov (!%p325_p0, %s743_s24), 3  ;;  %v872_v32 = vld [vmem:[%s1077_s26 + $0x70] ss:$8 sps:$4 sm:$0xff]   ;;  %s1099_s6 = sshll.u32 %s936_s16, 1  ;;  %v521_v36 = vsub.s32 0, %v520_v35  ;;  %v525_v38 = vsub.s32 1, %v520_v35 }
  0x30   : > { %s744_s14 = sshll.u32 %s1161_s24, 2  ;;  %462 = vmatpush1.bf16.msra.mxu0 %v854_v20  ;;  %p336_p1 = scmp.lt.s32.totalorder %s1099_s6, 3 }
  0x31   : > { %463 = vmatprep.subr.bf16.mxu0 %v855_v21  ;;  %s331_s5 = scalar_lea.vmem %s1141_s0, %s744_s14  ;;  %s321_s16 = sand.u32 1, %s920_s12  }
  0x32   : > { %v873_v33 = vld [vmem:[%s331_s5] sm:$0xff]   ;;  %s337_s7 = scalar_select %p336_p1, %s1099_s6, 3 }
  0x33   : > { %s742_s11 = sshll.u32 %s321_s16, 4  ;;  %s775_s12 = sshll.u32 (%p1042_p9), %s940_s17, 3 }
  0x34   : > { %464 = vmatpush1.bf16.msra.mxu0 %v857_v22  ;;  %s338_s10 = scalar_lea.vmem %s1143_s2, %s337_s7  ;;  %s323_s21 = scalar_lea.vmem [#allocation4], %s742_s11 }
  0x35   : > { %465 = vmatprep.subr.bf16.mxu0 %v858_v23  ;;  %v517_v37 = vld [vmem:[%s338_s10] sm:$0x3]  ;;  %s593_s24 = sadd.s32 (%p1042_p9), %s775_s12, %s1099_s6 }
  0x36   : > { %v522_v39 = vrot.slane %v517_v37, %v521_v36  ;;  %v526_v40 = vrot.slane %v517_v37, %v525_v38  ;;  %s769_s25 = sshll.u32 (%p1042_p9), %s593_s24, 2 }
  0x37   : > { %s595_s28 = scalar_lea.vmem (%p1042_p9), %s1144_s3, %s769_s25 }
  0x38   : > { %466 = vmatpush1.bf16.msra.mxu0 %v860_v24 }
  0x39   : > { %467 = vmatprep.subr.bf16.mxu0 %v861_v25 }
  0x3c   : > { %468 = vmatpush1.bf16.msra.mxu0 %v863_v26 }
  0x3d   : > { %469 = vmatprep.subr.bf16.mxu0 %v864_v27 }
  0x40   : > { %470 = vmatpush1.bf16.msra.mxu0 %v866_v28 }
  0x41   : > { %471 = vmatprep.subr.bf16.mxu0 %v867_v29 }
  0x44   : > { %472 = vmatpush1.bf16.msra.mxu0 %v869_v30 }
  0x45   : > { %473 = vmatprep.subr.bf16.mxu0 %v870_v31 }
  0x48   : > { %474 = vmatpush1.bf16.msra.mxu0 %v872_v32 }
  0x4b   : > { %492 = vmatmul.mubr.bf16.vlgmr.msra.gmra.mrb[0].mxu0 %v873_v33 }
 0x11e   : > { %v493_v41 = vpop.f32.mrb[0].mxu0 }
 0x11f   : > { %v529_v42 = vadd.f32 %v522_v39, %v493_v41  ;;  %v495_v43 = vpop.f32.mrb[1].mxu0 }
 0x120   : > { %v530_v44 = vadd.f32 %v526_v40, %v495_v43  ;;  %v497_v45 = vpop.f32.mrb[2].mxu0 }
 0x121   : > { %v537_v46 = vmul.f32 0.044715, %v529_v42  ;;  %v531_v47 = vadd.f32 %v522_v39, %v497_v45  ;;  %v499_v48 = vpop.f32.mrb[3].mxu0  ;;  %v533_v7 = vmul.f32 0.5, %v529_v42 }
 0x122   : > { %v538_v49 = vmul.f32 0.044715, %v530_v44  ;;  %v532_v50 = vadd.f32 %v526_v40, %v499_v48  ;;  %v534_v10 = vmul.f32 0.5, %v530_v44 }
 0x123   : > { %v541_v51 = vmul.f32 %v537_v46, %v529_v42  ;;  %v539_v52 = vmul.f32 0.044715, %v531_v47  ;;  %v535_v14 = vmul.f32 0.5, %v531_v47 }
 0x124   : > { %v542_v53 = vmul.f32 %v538_v49, %v530_v44  ;;  %v540_v54 = vmul.f32 0.044715, %v532_v50  ;;  %v536_v17 = vmul.f32 0.5, %v532_v50 }
 0x125   : > { %v545_v55 = vmul.f32 %v541_v51, %v529_v42  ;;  %v543_v56 = vmul.f32 %v539_v52, %v531_v47 }
 0x126   : > { %v546_v57 = vmul.f32 %v542_v53, %v530_v44  ;;  %v544_v58 = vmul.f32 %v540_v54, %v532_v50 }
 0x127   : > { %v549_v59 = vadd.f32 %v545_v55, %v529_v42  ;;  %v547_v60 = vmul.f32 %v543_v56, %v531_v47 }
 0x128   : > { %v550_v61 = vadd.f32 %v546_v57, %v530_v44  ;;  %v548_v62 = vmul.f32 %v544_v58, %v532_v50 }
 0x129   : > { %v553_v63 = vmul.f32 0.7978846, %v549_v59  ;;  %v551_v0 = vadd.f32 %v547_v60, %v531_v47 }
 0x12a   : > { %v554_v1 = vmul.f32 0.7978846, %v550_v61  ;;  %v552_v2 = vadd.f32 %v548_v62, %v532_v50 }
 0x12b   : > { %874 = vtanh.f32 %v553_v63  ;;  %v555_v3 = vmul.f32 0.7978846, %v551_v0 }
 0x12c   : > { %876 = vtanh.f32 %v554_v1  ;;  %v556_v4 = vmul.f32 0.7978846, %v552_v2 }
 0x12d   : > { %878 = vtanh.f32 %v555_v3 }
 0x12e   : > { %880 = vtanh.f32 %v556_v4 }
 0x135   : > { %v875_v5 = vpop.eup %874 }
 0x136   : > { %v877_v6 = vpop.eup %876  ;;  %v561_v8 = vadd.f32 1.0, %v875_v5 }
 0x137   : > { %v879_v9 = vpop.eup %878  ;;  %v562_v11 = vadd.f32 1.0, %v877_v6 }
 0x138   : > { %v881_v12 = vpop.eup %880  ;;  %v565_v13 = vmul.f32 %v561_v8, %v533_v7  ;;  %v563_v15 = vadd.f32 1.0, %v879_v9 }
 0x139   : > { %v566_v16 = vmul.f32 %v562_v11, %v534_v10  ;;  %v564_v18 = vadd.f32 1.0, %v881_v12  ;;  %589 = sbr.rel (!%p1042_p9) target bundleno = 328 (0x148), region = 82 }
 0x13a   : > { %v567_v19 = vmul.f32 %v563_v15, %v535_v14 }
 0x13b   : > { %v773_v20 = vpack.c.bf16 %v566_v16, %v565_v13  ;;  %v568_v21 = vmul.f32 %v564_v18, %v536_v17 }
 0x13d   : > { %581 = vst [vmem:[%s323_s21] sm:$0xff] %v773_v20  ;;  %v774_v22 = vpack.c.bf16 %v568_v21, %v567_v19 }
 0x13f   : > { %582 = vst [vmem:[%s323_s21 + $0x8] sm:$0xff] %v774_v22 }
 0x144   : > { %v625_v23 = vld [vmem:[%s323_s21] sm:$0xff] }
 0x145   : > { %626 = vst [vmem:[%s595_s28] sm:$0xff] %v625_v23 }
 0x146   : > { %v627_v24 = vld [vmem:[%s323_s21 + $0x8] sm:$0xff] }
 0x147   : > { %628 = vst [vmem:[%s595_s28 + $0x10] sm:$0xff] %v627_v24 }
 0x148 PF: > { %s13_s20 = sadd.s32 1, %s952_s20   ;;  %s1146_s12 = smov %s924_s13 }
 0x149   : > { %p10_p2 = scmp.ge.s32.totalorder %s13_s20, 6   ;;  %s1147_s13 = smov %s1047_s4 }
 0x14a   : > { %s1148_s14 = smov %s932_s15  ;;  %s1149_s15 = smov %s1036_s27 }
 0x14b   : > { %s1150_s16 = smov %s944_s18  ;;  %s1151_s17 = smov %s948_s19 }
 0x14c   : > { %s1152_s18 = smov %s1155_s22  ;;  %s1153_s19 = smov %s1159_s23 }
 0x14d   :  { %12 = sbr.rel (!%p10_p2) target bundleno = 5 (0x5), region = 157 }

// kernel: encoder_decoder_forward.37
= control target key start
LH: loop header
LB: loop body
LE: loop exit
PB: predicated region body
PF: predicated region fallthrough
CT: control target
= control target key end

     0   :  { %s1060_s15 = smov 0   ;;  %s1062_s16 = smov 0   ;;  %s1202_s0 = inlined_call_operand.vmem [shape: bf16[32,512], index: 0, kind: input, shape index: {}]   ;;  %s1203_s1 = inlined_call_operand.vmem [shape: bf16[512,128], index: 1, kind: input, shape index: {}]   ;;  %s1204_s2 = inlined_call_operand.vmem [shape: f32[1,128], index: 2, kind: input, shape index: {}]   ;;  %s1205_s3 = inlined_call_operand.vmem [shape: f32[32,128], index: 3, kind: input, shape index: {}]   ;;  %s1206_s4 = inlined_call_operand.vmem [shape: f32[32,128], index: 4, kind: output, shape index: {}]  }
   0x1   :  { %s1064_s17 = smov 0  }
   0x2 LB: > { %s33_s18 = sadd.s32 1, %s1029_s16  ;;  %p857_p0 = scmp.ge.s32.totalorder %s1033_s17, 1  ;;  %s1033_s17 = sphi %s1064_s17, %s14_s17   ;;  %s1029_s16 = sphi %s1062_s16, %s1208_s16   ;;  %s1025_s15 = sphi %s1060_s15, %s1207_s15  }
   0x3   : > { %p35_p1 = scmp.ge.s32.totalorder %s33_s18, 2  ;;  %p232_p2 = scmp.lt.s32.totalorder %s1033_s17, 3 }
   0x5   : > { %s1210_s18 = smov (%p35_p1, %s33_s18), 0  ;;  %p233_p3 = pnand %p857_p0, %p232_p2 }
   0x6   : > { %v973_v0 = vld [vmem:[%s1203_s1 + $0x40] sm:$0xff] (!%p233_p3)   ;;  %v977_v4 = vld [vmem:[%s1203_s1 + $0x48] sm:$0xff] (!%p233_p3)   ;;  %v981_v8 = vld [vmem:[%s1203_s1 + $0x50] sm:$0xff] (!%p233_p3)   ;;  %s858_s29 = sshll.u32 (!%p233_p3), %s1025_s15, 1 }
   0x7   : > { %236 = sbr.rel (%p233_p3) target bundleno = 265 (0x109), region = 36  ;;  %v974_v1 = vld [vmem:[%s1203_s1 + $0xc0] sm:$0xff] (!%p233_p3)   ;;  %905 = vmatprep.subr.bf16.mxu0 (!%p233_p3), %v973_v0  ;;  %v978_v5 = vld [vmem:[%s1203_s1 + $0xc8] sm:$0xff] (!%p233_p3)   ;;  %v982_v9 = vld [vmem:[%s1203_s1 + $0xd0] sm:$0xff] (!%p233_p3)   ;;  %p287_p4 = scmp.lt.s32.totalorder (!%p233_p3), %s858_s29, 3 }
   0x8   : > { %v975_v2 = vld [vmem:[%s1203_s1] sm:$0xff] (!%p233_p3)   ;;  %927 = vmatprep.subr.bf16.mxu1 (!%p233_p3), %v974_v1  ;;  %v979_v6 = vld [vmem:[%s1203_s1 + $0x8] sm:$0xff] (!%p233_p3)   ;;  %v983_v10 = vld [vmem:[%s1203_s1 + $0x10] sm:$0xff] (!%p233_p3)  }
   0x9   : > { %v976_v3 = vld [vmem:[%s1203_s1 + $0x80] sm:$0xff] (!%p233_p3)   ;;  %906 = vmatpush3.bf16.msra.mxu0 (!%p233_p3), %v975_v2  ;;  %v980_v7 = vld [vmem:[%s1203_s1 + $0x88] sm:$0xff] (!%p233_p3)   ;;  %v984_v11 = vld [vmem:[%s1203_s1 + $0x90] sm:$0xff] (!%p233_p3)  }
   0xa   : > { %928 = vmatpush3.bf16.msra.mxu1 (!%p233_p3), %v976_v3  ;;  %907 = vmatprep.subr.bf16.mxu0 (!%p233_p3), %v977_v4  ;;  %v985_v12 = vld [vmem:[%s1203_s1 + $0x58] sm:$0xff] (!%p233_p3)   ;;  %v989_v16 = vld [vmem:[%s1203_s1 + $0x60] sm:$0xff] (!%p233_p3)   ;;  %v993_v20 = vld [vmem:[%s1203_s1 + $0x68] sm:$0xff] (!%p233_p3)  }
   0xb   : > { %929 = vmatprep.subr.bf16.mxu1 (!%p233_p3), %v978_v5  ;;  %v986_v13 = vld [vmem:[%s1203_s1 + $0xd8] sm:$0xff] (!%p233_p3)   ;;  %v990_v17 = vld [vmem:[%s1203_s1 + $0xe0] sm:$0xff] (!%p233_p3)   ;;  %v994_v21 = vld [vmem:[%s1203_s1 + $0xe8] sm:$0xff] (!%p233_p3)  }
   0xc   : > { %v987_v14 = vld [vmem:[%s1203_s1 + $0x18] sm:$0xff] (!%p233_p3)   ;;  %v991_v18 = vld [vmem:[%s1203_s1 + $0x20] sm:$0xff] (!%p233_p3)   ;;  %v995_v22 = vld [vmem:[%s1203_s1 + $0x28] sm:$0xff] (!%p233_p3)  }
   0xd   : > { %908 = vmatpush3.bf16.msra.mxu0 (!%p233_p3), %v979_v6  ;;  %v988_v15 = vld [vmem:[%s1203_s1 + $0x98] sm:$0xff] (!%p233_p3)   ;;  %v992_v19 = vld [vmem:[%s1203_s1 + $0xa0] sm:$0xff] (!%p233_p3)   ;;  %v996_v23 = vld [vmem:[%s1203_s1 + $0xa8] sm:$0xff] (!%p233_p3)  }
   0xe   : > { %930 = vmatpush3.bf16.msra.mxu1 %v980_v7  ;;  %909 = vmatprep.subr.bf16.mxu0 %v981_v8  ;;  %s1212_s29 = smov (!%p287_p4, %s858_s29), 3  ;;  %v997_v24 = vld [vmem:[%s1203_s1 + $0x70] sm:$0xff]   ;;  %v1001_v28 = vld [vmem:[%s1203_s1 + $0x78] sm:$0xff]   ;;  %v901_v45 = vld [vmem:[%s1204_s2] ss:$0 sm:$0xff] }
   0xf   : > { %931 = vmatprep.subr.bf16.mxu1 %v982_v9  ;;  %v998_v25 = vld [vmem:[%s1203_s1 + $0xf0] sm:$0xff]   ;;  %s904_s30 = sshll.u32 %s1212_s29, 4  ;;  %v1002_v29 = vld [vmem:[%s1203_s1 + $0xf8] sm:$0xff]   ;;  %s862_s21 = sshll.u32 %s1212_s29, 3 }
  0x10   : > { %v999_v26 = vld [vmem:[%s1203_s1 + $0x30] sm:$0xff]   ;;  %s294_s12 = scalar_lea.vmem %s1202_s0, %s904_s30  ;;  %v1003_v30 = vld [vmem:[%s1203_s1 + $0x38] sm:$0xff]   ;;  %s316_s24 = scalar_lea.vmem %s1205_s3, %s862_s21 }
  0x11   : > { %910 = vmatpush3.bf16.msra.mxu0 %v983_v10  ;;  %v1000_v27 = vld [vmem:[%s1203_s1 + $0xb0] sm:$0xff]   ;;  %v1004_v31 = vld [vmem:[%s1203_s1 + $0xb8] sm:$0xff]   ;;  %v716_v50 = vld [vmem:[%s316_s24] sm:$0xff]  ;;  %s325_s28 = scalar_lea.vmem %s1206_s4, %s862_s21 }
  0x12   : > { %932 = vmatpush3.bf16.msra.mxu1 %v984_v11  ;;  %911 = vmatprep.subr.bf16.mxu0 %v985_v12  ;;  %v1005_v32 = vld [vmem:[%s294_s12] ss:$16 sps:$4 sm:$0xff]   ;;  %v1007_v33 = vld [vmem:[%s294_s12 + $0x4] ss:$16 sps:$4 sm:$0xff]   ;;  %v1008_v34 = vld [vmem:[%s294_s12 + $0x8] ss:$16 sps:$4 sm:$0xff]  }
  0x13   : > { %933 = vmatprep.subr.bf16.mxu1 %v986_v13  ;;  %v1010_v35 = vld [vmem:[%s294_s12 + $0xc] ss:$16 sps:$4 sm:$0xff]   ;;  %648 = vmatprep.mubr.bf16.mxu0 %v1007_v33 }
  0x14   : > { %689 = vmatprep.mubr.bf16.mxu1 %v1010_v35  ;;  %v717_v53 = vld [vmem:[%s316_s24 + $0x8] sm:$0xff] }
  0x15   : > { %912 = vmatpush3.bf16.msra.mxu0 %v987_v14 }
  0x16   : > { %934 = vmatpush3.bf16.msra.mxu1 %v988_v15  ;;  %913 = vmatprep.subr.bf16.mxu0 %v989_v16 }
  0x17   : > { %935 = vmatprep.subr.bf16.mxu1 %v990_v17 }
  0x19   : > { %914 = vmatpush3.bf16.msra.mxu0 %v991_v18 }
  0x1a   : > { %936 = vmatpush3.bf16.msra.mxu1 %v992_v19  ;;  %915 = vmatprep.subr.bf16.mxu0 %v993_v20 }
  0x1b   : > { %937 = vmatprep.subr.bf16.mxu1 %v994_v21 }
  0x1d   : > { %916 = vmatpush3.bf16.msra.mxu0 %v995_v22 }
  0x1e   : > { %938 = vmatpush3.bf16.msra.mxu1 %v996_v23  ;;  %917 = vmatprep.subr.bf16.mxu0 %v997_v24 }
  0x1f   : > { %939 = vmatprep.subr.bf16.mxu1 %v998_v25 }
  0x21   : > { %918 = vmatpush3.bf16.msra.mxu0 %v999_v26 }
  0x22   : > { %940 = vmatpush3.bf16.msra.mxu1 %v1000_v27  ;;  %919 = vmatprep.subr.bf16.mxu0 %v1001_v28 }
  0x23   : > { %941 = vmatprep.subr.bf16.mxu1 %v1002_v29 }
  0x25   : > { %920 = vmatpush3.bf16.msra.mxu0 %v1003_v30 }
  0x26   : > { %942 = vmatpush3.bf16.msra.mxu1 %v1004_v31 }
  0x28   : > { %649 = vmatmul.mubr.bf16.vlgmr.msra.gmra.mrb[0].mxu0 %v1005_v32 }
  0x29   : > { %690 = vmatmul.mubr.bf16.vlgmr.msra.gmra.mrb[0].mxu1 %v1008_v34 }
  0xfb   : > { %v921_v36 = vpop.f32.mrb[0].mxu0 }
  0xfc   : > { %v943_v37 = vpop.f32.mrb[0].mxu1  ;;  %v922_v38 = vpop.f32.mrb[1].mxu0 }
  0xfd   : > { %v923_v39 = vadd.f32 %v922_v38, %v921_v36  ;;  %v944_v40 = vpop.f32.mrb[1].mxu1  ;;  %v924_v41 = vpop.f32.mrb[2].mxu0 }
  0xfe   : > { %v945_v42 = vadd.f32 %v944_v40, %v943_v37  ;;  %v946_v43 = vpop.f32.mrb[2].mxu1  ;;  %v925_v44 = vpop.f32.mrb[3].mxu0 }
  0xff   : > { %v926_v46 = vadd.f32 %v925_v44, %v924_v41  ;;  %v947_v47 = vpop.f32.mrb[3].mxu1 }
 0x100   : > { %v692_v48 = vadd.f32 %v945_v42, %v923_v39  ;;  %v948_v49 = vadd.f32 %v947_v47, %v946_v43 }
 0x102   : > { %v714_v51 = vadd.f32 %v901_v45, %v692_v48  ;;  %v695_v52 = vadd.f32 %v948_v49, %v926_v46 }
 0x104   : > { %v718_v54 = vadd.f32 %v716_v50, %v714_v51  ;;  %v715_v55 = vadd.f32 %v901_v45, %v695_v52 }
 0x106   : > { %720 = vst [vmem:[%s325_s28] sm:$0xff] %v718_v54  ;;  %v719_v56 = vadd.f32 %v717_v53, %v715_v55 }
 0x108   : > { %721 = vst [vmem:[%s325_s28 + $0x8] sm:$0xff] %v719_v56 }
 0x109 PF: > { %s14_s17 = sadd.s32 1, %s1033_s17   ;;  %s1207_s15 = smov %s1029_s16 }
 0x10a   : > { %p11_p5 = scmp.ge.s32.totalorder %s14_s17, 4   ;;  %s1208_s16 = smov %s1210_s18 }
 0x10c   :  { %13 = sbr.rel (!%p11_p5) target bundleno = 2 (0x2), region = 83 }

// kernel: encoder_decoder_forward.61
= control target key start
LH: loop header
LB: loop body
LE: loop exit
PB: predicated region body
PF: predicated region fallthrough
CT: control target
= control target key end

     0   :  { %8 = vsyncpa [#allocation4], 0  ;;  %s916_s0 = inlined_call_operand.vmem [shape: f32[32,128], index: 0, kind: input, shape index: {}]   ;;  %s917_s1 = inlined_call_operand.vmem [shape: bf16[256,128], index: 1, kind: input, shape index: {}]   ;;  %s918_s2 = inlined_call_operand.vmem [shape: f32[1,256], index: 2, kind: input, shape index: {}]   ;;  %s919_s3 = inlined_call_operand.hbm [shape: f32[32,256], index: 3, kind: output, shape index: {}]  }
   0x1   :  { %10 = vsyncpa [#allocation4 + $0x1], 0  ;;  %s770_s12 = smov 0   ;;  %s772_s13 = smov 0  }
   0x2   :  { %s774_s14 = smov 0   ;;  %s776_s15 = smov 0  }
   0x3   :  { %s778_s16 = smov 0   ;;  %s780_s17 = smov 0  }
   0x4   :  { %s782_s18 = smov 0   ;;  %s784_s19 = smov 0  }
   0x5 LB: > { %s509_s20 = sadd.s32 4294967295, %s742_s19   ;;  %s510_s21 = sadd.s32 4294967294, %s742_s19   ;;  %s742_s19 = sphi %s784_s19, %s16_s19   ;;  %s738_s18 = sphi %s782_s18, %s928_s18   ;;  %s734_s17 = sphi %s780_s17, %s927_s17   ;;  %s730_s16 = sphi %s778_s16, %s926_s16   ;;  %s726_s15 = sphi %s776_s15, %s925_s15   ;;  %s722_s14 = sphi %s774_s14, %s924_s14   ;;  %s718_s13 = sphi %s772_s13, %s923_s13   ;;  %s714_s12 = sphi %s770_s12, %s922_s12  }
   0x6   : > { %s31_s22 = sadd.s32 1, %s734_s17  ;;  %s35_s23 = sadd.s32 1, %s738_s18 }
   0x7   : > { %p33_p0 = scmp.ge.s32.totalorder %s31_s22, 2  ;;  %p136_p1 = scmp.ne.s32.totalorder %s722_s14, %s718_s13 }
   0x8   : > { %p137_p2 = scmp.eq.s32.totalorder %s509_s20, 3  ;;  %p142_p5 = scmp.ne.s32.totalorder %s718_s13, %s714_s12 }
   0x9   : > { %s930_s22 = smov (%p33_p0, %s31_s22), 0  ;;  %s932_s23 = smov (!%p33_p0, %s35_s23), %s738_s18 }
   0xa   : > { %s122_s24 = ssub.s32 %s734_s17, %s930_s22  ;;  %p821_p3 = por %p137_p2, %p136_p1 }
   0xb   : > { %p37_p4 = scmp.ge.s32.totalorder %s932_s23, 2  ;;  %p143_p6 = scmp.eq.s32.totalorder %s510_s21, 3 }
   0xc   : > { %p513_p7 = scmp.ge.s32.totalorder %s742_s19, 1  ;;  %p191_p9 = scmp.lt.s32.totalorder %s742_s19, 5 }
   0xd   : > { %s934_s23 = smov (%p37_p4, %s932_s23), 0  ;;  %p830_p8 = por %p143_p6, %p142_p5 }
   0xe   : > { %s121_s27 = ssub.s32 %s738_s18, %s934_s23  ;;  %s126_s28 = sadd.s32 1, %s722_s14 }
   0xf   : > { %s123_s29 = sor.u32 %s122_s24, %s121_s27  ;;  %p192_p10 = pnand %p513_p7, %p191_p9 }
  0x10   : > { %p124_p11 = scmp.eq.s32.totalorder %s123_s29, 0  ;;  %s517_s4 = sshll.u32 (!%p192_p10), %s726_s15, 4  ;;  %v744_v0 = vmov (!%p192_p10), 0.0   ;;  %vm745_vm0 = vmmov (!%p192_p10), 0  }
  0x11   : > { %195 = sbr.rel (%p192_p10) target bundleno = 323 (0x143), region = 32  ;;  %544 = vmatprep.subr.bf16.mxu0 (!%p192_p10), %v744_v0  ;;  %p239_p12 = scmp.lt.s32.totalorder (!%p192_p10), %s517_s4, 31  ;;  %560 = vmatprep.mubr.msk.bf16.mxu0 (!%p192_p10), %vm745_vm0, %v744_v0 }
  0x12   : > { %s839_s30 = scalar_select %p124_p11, %s722_s14, %s126_s28  }
  0x13   : > { %s515_s9 = sshll.u32 (!%p192_p10), %s730_s16, 1  ;;  %p247_p0 = scmp.lt.s32.totalorder (!%p192_p10), %s726_s15, 1 }
  0x14   : > { %p230_p13 = scmp.lt.s32.totalorder (!%p192_p10), %s515_s9, 3  ;;  %s226_s24 = sand.u32 (!%p192_p10), 1, %s718_s13  }
  0x15   : > { %s514_s28 = sshll.u32 (!%p192_p10), %s226_s24, 4  ;;  %s534_s29 = sshll.u32 (!%p192_p10), %s730_s16, 2 }
  0x16   : > { %s401_s7 = sadd.s32 (!%p192_p10), %s726_s15, %s534_s29 }
  0x18   : > { %s936_s4 = smov (!%p239_p12, %s517_s4), 31  ;;  %s938_s9 = smov (!%p230_p13, %s515_s9), 3 }
  0x19   : > { %s518_s5 = sshll.u32 %s936_s4, 2  ;;  %s516_s10 = sshll.u32 %s938_s9, 3 }
  0x1a   : > { %s245_s8 = scalar_lea.vmem %s917_s1, %s518_s5  ;;  %s236_s21 = scalar_lea.vmem %s916_s0, %s516_s10 }
  0x1b   : > { %v640_v1 = vld [vmem:[%s245_s8] sm:$0xff]   ;;  %v641_v2 = vld [vmem:[%s245_s8 + $0x8] sm:$0xff]   ;;  %v642_v3 = vld [vmem:[%s245_s8 + $0x10] sm:$0xff]   ;;  %s248_s27 = scalar_select %p247_p0, %s726_s15, 1 }
  0x1c   : > { %545 = vmatpush3.bf16.xpose.msra.mxu0 %v640_v1  ;;  %v643_v4 = vld [vmem:[%s245_s8 + $0x18] sm:$0xff]   ;;  %v644_v5 = vld [vmem:[%s245_s8 + $0x20] sm:$0xff]   ;;  %v645_v6 = vld [vmem:[%s245_s8 + $0x28] sm:$0xff]   ;;  %s531_s10 = sshll.u32 %s401_s7, 7  ;;  %s864_s15 = scalar_lea.sflag [#allocation4], %s226_s24 }
  0x1d   : > { %546 = vmatprep.subr.bf16.mxu0 %v744_v0  ;;  %v646_v7 = vld [vmem:[%s245_s8 + $0x30] sm:$0xff]   ;;  %v647_v8 = vld [vmem:[%s245_s8 + $0x38] sm:$0xff]   ;;  %v258_v9 = vld [vmem:[%s236_s21] sm:$0xff]  ;;  %s249_s6 = scalar_lea.vmem %s918_s2, %s248_s27  ;;  %s228_s8 = scalar_lea.vmem [#allocation3], %s514_s28 }
  0x1e   : > { %v259_v10 = vld [vmem:[%s236_s21 + $0x8] sm:$0xff]  ;;  %v527_v12 = vld [vmem:[%s249_s6] ss:$0 sm:$0xff]  ;;  %s404_s9 = sshll.u32 %s228_s8, 4  ;;  %s862_s20 = scalar_lea.hbm %s919_s3, %s531_s10  ;;  %s857_s9 = int_to_ptr.vmem [resolvable:$true] %s404_s9 }
  0x1f   : > { %v260_v11 = vpack.c.bf16 %v259_v10, %v258_v9  ;;  %s648_s21 = scalar_lea.vmem %s857_s9, 256  ;;  %s746_s27 = smov [#allocation3]  }
  0x20   : > { %p649_p1 = scmp.ne.s32.totalorder %s857_s9, %s648_s21  ;;  %s652_s28 = sshll.u32 %s746_s27, 4  ;;  %s653_s28 = int_to_ptr.vmem [resolvable:$false] %s652_s28 }
  0x21   : > { %s654_s29 = scalar_lea.vmem %s653_s28, 512  ;;  %p655_p5 = scmp.lt.s32.totalorder %s857_s9, %s653_s28 }
  0x22   : > { %p650_p2 = pnand %p649_p1, %p821_p3  ;;  %p656_p6 = scmp.lt.s32.totalorder %s654_s29, %s648_s21 }
  0x24   : > { %547 = vmatpush3.bf16.xpose.msra.mxu0 %v641_v2  ;;  %p651_p4 = pneg %p650_p2  ;;  %p657_p7 = por %p656_p6, %p655_p5 }
  0x25   : > { %548 = vmatprep.subr.bf16.mxu0 %v744_v0 }
  0x26   : > { %p658_p9 = pnand %p657_p7, %p651_p4 }
  0x2c   : > { %549 = vmatpush3.bf16.xpose.msra.mxu0 %v642_v3 }
  0x2d   : > { %550 = vmatprep.subr.bf16.mxu0 %v744_v0 }
  0x34   : > { %551 = vmatpush3.bf16.xpose.msra.mxu0 %v643_v4 }
  0x35   : > { %552 = vmatprep.subr.bf16.mxu0 %v744_v0 }
  0x3c   : > { %553 = vmatpush3.bf16.xpose.msra.mxu0 %v644_v5 }
  0x3d   : > { %554 = vmatprep.subr.bf16.mxu0 %v744_v0 }
  0x44   : > { %555 = vmatpush3.bf16.xpose.msra.mxu0 %v645_v6 }
  0x45   : > { %556 = vmatprep.subr.bf16.mxu0 %v744_v0 }
  0x4c   : > { %557 = vmatpush3.bf16.xpose.msra.mxu0 %v646_v7 }
  0x4d   : > { %558 = vmatprep.subr.bf16.mxu0 %v744_v0 }
  0x54   : > { %559 = vmatpush3.bf16.xpose.msra.mxu0 %v647_v8 }
  0x5b   : > { %561 = vmatmul.mubr.bf16.vlgmr.msra.gmra.mrb[0].mxu0 %v260_v11 }
 0x12e   : > { %v361_v13 = vpop.f32.mrb[0].mxu0 }
 0x12f   : > { %v384_v14 = vadd.f32 %v527_v12, %v361_v13  ;;  %v562_v15 = vpop.f32.mrb[1].mxu0 }
 0x130   : > { %v364_v16 = vpop.f32.mrb[2].mxu0 }
 0x131   : > { %386 = vst [vmem:[%s228_s8] sm:$0xff] %v384_v14  ;;  %v385_v17 = vadd.f32 %v527_v12, %v364_v16  ;;  %v563_v18 = vpop.f32.mrb[3].mxu0 }
 0x133   : > { %387 = vst [vmem:[%s228_s8 + $0x8] sm:$0xff] %v385_v17 }
 0x134   : > { %661 = shalt.err (!%p658_p9)
}
 0x135   : > { %s662_s24 = scalar_lea.hbm %s862_s20, 256  ;;  %s666_s6 = scalar_lea.hbm %s919_s3, 1024 }
 0x136   : > { %p663_p10 = scmp.ne.s32.totalorder %s862_s20, %s662_s24  ;;  %p667_p13 = scmp.lt.u32.totalorder %s862_s20, %s919_s3 }
 0x137   : > { %p668_p0 = scmp.lt.u32.totalorder %s666_s6, %s662_s24  ;;  %p670_p2 = scmp.lt.u32.totalorder %s662_s24, %s862_s20 }
 0x138   : > { %p664_p11 = pnand %p663_p10, %p821_p3 }
 0x139   : > { %p669_p1 = por %p668_p0, %p667_p13 }
 0x13a   : > { %p665_p12 = pneg %p664_p11 }
 0x13b   : > { %p671_p4 = por %p670_p2, %p669_p1 }
 0x13d   : > { %p672_p5 = pnand %p671_p4, %p665_p12 }
 0x13f   : > { %675 = shalt.err (!%p672_p5)
}
 0x140   : > { %s747_s10 = smov 128   ;;  %s748_s16 = smov 256  }
 0x141   : > { %s749_s11 = smov 8  }
 0x142   : > { %564 = dma.vmem_to_hbm [thread:$0]  (%p821_p3), %s857_s9, 256, %s862_s20, %s864_s15, %s747_s10, %s748_s16, %s749_s11  }
 0x143 PF: > { %p570_p6 = scmp.ge.s32.totalorder %s742_s19, 2  ;;  %s419_s21 = sand.u32 1, %s714_s12  }
 0x144   : > { %s420_s27 = scalar_lea.sflag [#allocation4], %s419_s21 }
 0x145   : > { %p567_p7 = pnand %p570_p6, %p830_p8 }
 0x147   : > { %709 = dma.done.wait (!%p567_p7), %s420_s27, 256  }
 0x148   : > { %711 = vsyncadd (!%p567_p7), %s420_s27, 4294967040  ;;  %s16_s19 = sadd.s32 1, %s742_s19   ;;  %s922_s12 = smov %s718_s13 }
 0x149   : > { %p13_p9 = scmp.ge.s32.totalorder %s16_s19, 6   ;;  %s923_s13 = smov %s722_s14 }
 0x14a   : > { %s924_s14 = smov %s839_s30  ;;  %s925_s15 = smov %s734_s17 }
 0x14b   : > { %s926_s16 = smov %s738_s18  ;;  %s927_s17 = smov %s930_s22 }
 0x14c   : > { %s928_s18 = smov %s934_s23  ;;  %15 = sbr.rel (!%p13_p9) target bundleno = 5 (0x5), region = 81 }
 0x153   :  { %425 = vsyncpa [#allocation4], 1 }
 0x154   :  { %427 = vsyncpa [#allocation4 + $0x1], 1 }

</bundles_post_ra>
